<compile_context>
chip_gen: v6e
topology: v6e:2x2x1
jax: 0.10.0
libtpu: 0.0.40
codegen_flags: <defaults>
</compile_context>

<pallas_src>
import functools

import jax
import jax.numpy as jnp
from jax.experimental import pallas as pl
from jax.experimental.pallas import tpu as pltpu


def _gates_activation_dtype():
    """bf16 gate nonlinearities on v6e/v7x (bf16 EUP/VPU); f32 elsewhere."""
    try:
        kind = jax.devices()[0].device_kind.lower()
    except Exception:
        return jnp.float32
    if ("v6" in kind) or ("v7" in kind) or ("7x" in kind):
        return jnp.bfloat16
    return jnp.float32


_GATES_DTYPE = _gates_activation_dtype()


# ----------------------------------------------------------------------------
# Fused Pallas kernel: full LSTM stack + MLP head in one kernel invocation.
# ----------------------------------------------------------------------------
def _fused_model_kernel(*refs, T, B, H, L, num_outputs, gates_dtype):
    """refs layout (inputs, outputs, scratch):
       inputs : x_flat (T*B, In), h0 (L, B, H), c0 (L, B, H),
                [wih_t (in,4H), whh_t (H,4H), b (1,4H)] * L,
                fc1_w (H,H), fc1_b (1,H), fc2_w (H,H), fc2_b (1,H),
                head_w (H,O), head_b (1,O)
       outputs: out (T*B, O), h_T (L, B, H), c_T (L, B, H)
       scratch: seq (T*B, H) VMEM  (last layer's sequence for the MLP head)
    """
    idx = 0
    x_ref = refs[idx]; idx += 1
    h0_ref = refs[idx]; idx += 1
    c0_ref = refs[idx]; idx += 1
    lstm_refs = []
    for _ in range(L):
        lstm_refs.append((refs[idx], refs[idx + 1], refs[idx + 2]))
        idx += 3
    fc1_w_ref, fc1_b_ref, fc2_w_ref, fc2_b_ref, head_w_ref, head_b_ref = \
        refs[idx:idx + 6]
    idx += 6
    out_ref, h_out_ref, c_out_ref = refs[idx:idx + 3]
    idx += 3
    seq_ref = refs[idx]

    f32 = jnp.float32

    # --- Layer-0 prologue: hoist the whole-sequence input projection off the
    # recurrence (one MXU matmul), kept as an SSA value (8 vregs), no scratch.
    wih0_ref, _, b0_ref = lstm_refs[0]
    gx0 = (jnp.dot(x_ref[...], wih0_ref[...], preferred_element_type=f32)
           + b0_ref[...])                                       # (T*B, 4H)

    # Hoist weight loads out of the recurrence (small: a few vregs each).
    whh = [lstm_refs[l][1][...] for l in range(L)]              # (H, 4H)
    wih = [None] + [lstm_refs[l][0][...] for l in range(1, L)]  # (H, 4H), l>0
    bias = [None] + [lstm_refs[l][2][...] for l in range(1, L)]  # (1, 4H), l>0

    # Per-layer carries and "most recent output" handoff buffers.
    h = [h0_ref[l] for l in range(L)]
    c = [c0_ref[l] for l in range(L)]
    prev_out = [None] * L

    def cell(gates, c_prev):
        # 2 EUP pushes on the full packed (B, 4H) gates vreg instead of 4
        # quarter-vreg pushes, + 1 tanh on c_new.  PyTorch order [i, f, g, o].
        g_act = gates.astype(gates_dtype)
        sig = jax.nn.sigmoid(g_act).astype(f32)
        tan = jnp.tanh(g_act).astype(f32)
        i_g = sig[:, 0 * H:1 * H]
        f_g = sig[:, 1 * H:2 * H]
        g_g = tan[:, 2 * H:3 * H]
        o_g = sig[:, 3 * H:4 * H]
        c_new = f_g * c_prev + i_g * g_g          # cell state kept in f32
        h_new = o_g * jnp.tanh(c_new)
        return h_new, c_new

    # --- Wavefront over time: macro step s runs layer l at time t = s - l, so
    # the L per-layer serial chains overlap.  All indices are static Python
    # ints -> static vreg slices; the loop is fully unrolled.
    for s in range(T + L - 1):
        inputs_snapshot = list(prev_out)   # layer outputs as of macro step s-1
        for l in range(L):
            t = s - l
            if t < 0 or t >= T:
                continue
            if l == 0:
                gates = gx0[t * B:(t + 1) * B, :] + jnp.dot(
                    h[0], whh[0], preferred_element_type=f32)
            else:
                # x_in is layer l-1's output at time t, produced at macro step
                # s-1 -> the x_in @ W_ih matmul is OFF the serial h-chain; only
                # h @ W_hh is on it.
                x_in = inputs_snapshot[l - 1]
                gates = (jnp.dot(x_in, wih[l], preferred_element_type=f32)
                         + jnp.dot(h[l], whh[l], preferred_element_type=f32)
                         + bias[l])
            h_new, c_new = cell(gates, c[l])
            h[l], c[l] = h_new, c_new
            prev_out[l] = h_new
            if l == L - 1:
                # Collect last layer's sequence for the fused MLP head
                # (static-slice vst, off the critical chain).
                seq_ref[t * B:(t + 1) * B, :] = h_new

    # Final hidden state per layer.
    for l in range(L):
        h_out_ref[l] = h[l]
        c_out_ref[l] = c[l]

    # --- Fused MLP head on the last layer's sequence (already in VMEM).
    y = jnp.dot(seq_ref[...], fc1_w_ref[...],
                preferred_element_type=f32) + fc1_b_ref[...]
    y = jnp.maximum(y, 0.0)
    y = jnp.dot(y, fc2_w_ref[...],
                preferred_element_type=f32) + fc2_b_ref[...]
    y = jnp.maximum(y, 0.0)
    out_ref[...] = jnp.dot(y, head_w_ref[...],
                           preferred_element_type=f32) + head_b_ref[...]


def _fused_forward(x, h0, c0, flat_weights, *, num_outputs, gates_dtype):
    """x: (T, B, In); h0/c0: (L, B, H).  Single pallas_call for the model."""
    T, B, In = x.shape
    L, _, H = h0.shape
    O = num_outputs

    vmem = pl.BlockSpec(memory_space=pltpu.MemorySpace.VMEM)
    n_in = 3 + len(flat_weights)
    kernel = functools.partial(_fused_model_kernel, T=T, B=B, H=H, L=L,
                               num_outputs=O, gates_dtype=gates_dtype)

    # NOTE: at these shapes total VMEM use is well under the default scoped
    # limit on v5e/v6e/v7x; if H/B/T scale up, set
    # pltpu.CompilerParams(vmem_limit_bytes=...) and re-check.
    out_flat, h_T, c_T = pl.pallas_call(
        kernel,
        out_shape=(jax.ShapeDtypeStruct((T * B, O), jnp.float32),
                   jax.ShapeDtypeStruct((L, B, H), jnp.float32),
                   jax.ShapeDtypeStruct((L, B, H), jnp.float32)),
        in_specs=[vmem] * n_in,
        out_specs=(vmem, vmem, vmem),
        scratch_shapes=[pltpu.VMEM((T * B, H), jnp.float32)],
    )(x.reshape(T * B, In), h0, c0, *flat_weights)

    return out_flat.reshape(T, B, O), h_T, c_T


# ----------------------------------------------------------------------------
# Model: parameter init + forward (glue in plain JAX)
# ----------------------------------------------------------------------------
def init_params(key, inputs_size, hidden_size, outputs_size, num_layers):
    """Deterministic init mirroring PyTorch uniform(-1/sqrt(fan), +1/sqrt(fan))."""
    params = {"lstm": []}
    H = hidden_size
    k_lstm = 1.0 / jnp.sqrt(jnp.float32(H))
    for layer in range(num_layers):
        in_dim = inputs_size if layer == 0 else hidden_size
        key, k1, k2, k3, k4 = jax.random.split(key, 5)
        w_ih = jax.random.uniform(k1, (4 * H, in_dim), jnp.float32, -k_lstm, k_lstm)
        w_hh = jax.random.uniform(k2, (4 * H, H), jnp.float32, -k_lstm, k_lstm)
        b_ih = jax.random.uniform(k3, (4 * H,), jnp.float32, -k_lstm, k_lstm)
        b_hh = jax.random.uniform(k4, (4 * H,), jnp.float32, -k_lstm, k_lstm)
        params["lstm"].append(
            (w_ih.T, w_hh.T, (b_ih + b_hh).reshape(1, 4 * H)))

    def linear_init(key, fan_in, fan_out):
        k = 1.0 / jnp.sqrt(jnp.float32(fan_in))
        kw, kb = jax.random.split(key)
        w = jax.random.uniform(kw, (fan_out, fan_in), jnp.float32, -k, k)
        b = jax.random.uniform(kb, (fan_out,), jnp.float32, -k, k)
        return w.T, b.reshape(1, fan_out)

    key, kf1, kf2, kh = jax.random.split(key, 4)
    params["fc1_w_t"], params["fc1_b"] = linear_init(kf1, H, H)
    params["fc2_w_t"], params["fc2_b"] = linear_init(kf2, H, H)
    params["head_w_t"], params["head_b"] = linear_init(kh, H, outputs_size)
    return params


@jax.jit
def model_forward(x, params, hidden):
    """x: (T, B, In); hidden = (h0, c0) each (L, B, H).  Returns (out, new_hidden)."""
    h0, c0 = hidden
    flat_weights = []
    for (wih_t, whh_t, b) in params["lstm"]:
        flat_weights += [wih_t, whh_t, b]
    flat_weights += [params["fc1_w_t"], params["fc1_b"],
                     params["fc2_w_t"], params["fc2_b"],
                     params["head_w_t"], params["head_b"]]
    num_outputs = params["head_b"].shape[1]

    out, h_T, c_T = _fused_forward(x, h0, c0, flat_weights,
                                   num_outputs=num_outputs,
                                   gates_dtype=_GATES_DTYPE)
    return out, (h_T, c_T)


# ----------------------------------------------------------------------------
if __name__ == "__main__":
    # Small shapes consistent with the module's forward signature.
    inputs_size, hidden_size, outputs_size = 8, 32, 16
    batch_size, num_layers, seq_len = 8, 2, 8

    key = jax.random.PRNGKey(0)
    k_x, k_h, k_c, k_p = jax.random.split(key, 4)

    x = jax.random.normal(k_x, (seq_len, batch_size, inputs_size), jnp.float32)
    hidden = (
        jax.random.normal(k_h, (num_layers, batch_size, hidden_size), jnp.float32),
        jax.random.normal(k_c, (num_layers, batch_size, hidden_size), jnp.float32),
    )
    params = init_params(k_p, inputs_size, hidden_size, outputs_size, num_layers)

    out, new_hidden = model_forward(x, params, hidden)
    jax.block_until_ready(out)
    jax.block_until_ready(new_hidden)

    assert out.shape == (seq_len, batch_size, outputs_size)
    assert new_hidden[0].shape == (num_layers, batch_size, hidden_size)
    assert new_hidden[1].shape == (num_layers, batch_size, hidden_size)
    print("KERNEL_OK")
</pallas_src>

<mosaic_0001>
module attributes {stable_mosaic.version = 11 : i64} {
  func.func @_fused_model_kernel(%arg0: memref<64x8xf32, #tpu.memory_space<vmem>>, %arg1: memref<2x8x32xf32, #tpu.memory_space<vmem>>, %arg2: memref<2x8x32xf32, #tpu.memory_space<vmem>>, %arg3: memref<8x128xf32, #tpu.memory_space<vmem>>, %arg4: memref<32x128xf32, #tpu.memory_space<vmem>>, %arg5: memref<1x128xf32, #tpu.memory_space<vmem>>, %arg6: memref<32x128xf32, #tpu.memory_space<vmem>>, %arg7: memref<32x128xf32, #tpu.memory_space<vmem>>, %arg8: memref<1x128xf32, #tpu.memory_space<vmem>>, %arg9: memref<32x32xf32, #tpu.memory_space<vmem>>, %arg10: memref<1x32xf32, #tpu.memory_space<vmem>>, %arg11: memref<32x32xf32, #tpu.memory_space<vmem>>, %arg12: memref<1x32xf32, #tpu.memory_space<vmem>>, %arg13: memref<32x16xf32, #tpu.memory_space<vmem>>, %arg14: memref<1x16xf32, #tpu.memory_space<vmem>>, %arg15: memref<64x16xf32, #tpu.memory_space<vmem>>, %arg16: memref<2x8x32xf32, #tpu.memory_space<vmem>>, %arg17: memref<2x8x32xf32, #tpu.memory_space<vmem>>, %arg18: memref<64x32xf32, #tpu.memory_space<vmem>>) attributes {dimension_semantics = [], scalar_prefetch = 0 : i64, scratch_operands = 1 : i64, tpu.core_type = #tpu.core_type<tc>} {
    %c0 = arith.constant 0 : index
    %c0_0 = arith.constant 0 : index
    %0 = vector.load %arg0[%c0, %c0_0] : memref<64x8xf32, #tpu.memory_space<vmem>>, vector<64x8xf32>
    %c0_1 = arith.constant 0 : index
    %c0_2 = arith.constant 0 : index
    %1 = vector.load %arg3[%c0_1, %c0_2] : memref<8x128xf32, #tpu.memory_space<vmem>>, vector<8x128xf32>
    %cst = arith.constant dense<0.000000e+00> : vector<64x128xf32>
    %2 = tpu.matmul %0, %1, %cst {dimension_numbers = #tpu.dot_dimension_numbers<[1], [0], [0], [1], [0, 0, 1, 1], [], []>} : vector<64x8xf32>, vector<8x128xf32>, vector<64x128xf32> -> vector<64x128xf32>
    %c0_3 = arith.constant 0 : index
    %c0_4 = arith.constant 0 : index
    %3 = vector.load %arg5[%c0_3, %c0_4] : memref<1x128xf32, #tpu.memory_space<vmem>>, vector<1x128xf32>
    %4 = vector.broadcast %3 : vector<1x128xf32> to vector<64x128xf32>
    %5 = arith.addf %2, %4 : vector<64x128xf32>
    %c0_5 = arith.constant 0 : index
    %c0_6 = arith.constant 0 : index
    %6 = vector.load %arg4[%c0_5, %c0_6] : memref<32x128xf32, #tpu.memory_space<vmem>>, vector<32x128xf32>
    %c0_7 = arith.constant 0 : index
    %c0_8 = arith.constant 0 : index
    %7 = vector.load %arg7[%c0_7, %c0_8] : memref<32x128xf32, #tpu.memory_space<vmem>>, vector<32x128xf32>
    %c0_9 = arith.constant 0 : index
    %c0_10 = arith.constant 0 : index
    %8 = vector.load %arg6[%c0_9, %c0_10] : memref<32x128xf32, #tpu.memory_space<vmem>>, vector<32x128xf32>
    %c0_11 = arith.constant 0 : index
    %c0_12 = arith.constant 0 : index
    %9 = vector.load %arg8[%c0_11, %c0_12] : memref<1x128xf32, #tpu.memory_space<vmem>>, vector<1x128xf32>
    %c0_13 = arith.constant 0 : index
    %c0_14 = arith.constant 0 : index
    %c0_15 = arith.constant 0 : index
    %10 = vector.load %arg1[%c0_13, %c0_14, %c0_15] : memref<2x8x32xf32, #tpu.memory_space<vmem>>, vector<1x8x32xf32>
    %11 = vector.shape_cast %10 : vector<1x8x32xf32> to vector<8x32xf32>
    %c1 = arith.constant 1 : index
    %c0_16 = arith.constant 0 : index
    %c0_17 = arith.constant 0 : index
    %12 = vector.load %arg1[%c1, %c0_16, %c0_17] : memref<2x8x32xf32, #tpu.memory_space<vmem>>, vector<1x8x32xf32>
    %13 = vector.shape_cast %12 : vector<1x8x32xf32> to vector<8x32xf32>
    %c0_18 = arith.constant 0 : index
    %c0_19 = arith.constant 0 : index
    %c0_20 = arith.constant 0 : index
    %14 = vector.load %arg2[%c0_18, %c0_19, %c0_20] : memref<2x8x32xf32, #tpu.memory_space<vmem>>, vector<1x8x32xf32>
    %15 = vector.shape_cast %14 : vector<1x8x32xf32> to vector<8x32xf32>
    %c1_21 = arith.constant 1 : index
    %c0_22 = arith.constant 0 : index
    %c0_23 = arith.constant 0 : index
    %16 = vector.load %arg2[%c1_21, %c0_22, %c0_23] : memref<2x8x32xf32, #tpu.memory_space<vmem>>, vector<1x8x32xf32>
    %17 = vector.shape_cast %16 : vector<1x8x32xf32> to vector<8x32xf32>
    %18 = vector.extract_strided_slice %5 {offsets = [0, 0], sizes = [8, 128], strides = [1, 1]} : vector<64x128xf32> to vector<8x128xf32>
    %cst_24 = arith.constant dense<0.000000e+00> : vector<8x128xf32>
    %19 = tpu.matmul %11, %6, %cst_24 {dimension_numbers = #tpu.dot_dimension_numbers<[1], [0], [0], [1], [0, 0, 1, 1], [], []>} : vector<8x32xf32>, vector<32x128xf32>, vector<8x128xf32> -> vector<8x128xf32>
    %20 = arith.addf %18, %19 : vector<8x128xf32>
    %21 = arith.negf %20 : vector<8x128xf32>
    %22 = math.exp %21 : vector<8x128xf32>
    %cst_25 = arith.constant 1.000000e+00 : f32
    %23 = vector.broadcast %cst_25 : f32 to vector<8x128xf32>
    %24 = arith.addf %23, %22 : vector<8x128xf32>
    %25 = arith.divf %23, %24 : vector<8x128xf32>
    %26 = math.tanh %20 : vector<8x128xf32>
    %27 = vector.extract_strided_slice %25 {offsets = [0, 0], sizes = [8, 32], strides = [1, 1]} : vector<8x128xf32> to vector<8x32xf32>
    %28 = vector.extract_strided_slice %25 {offsets = [0, 32], sizes = [8, 32], strides = [1, 1]} : vector<8x128xf32> to vector<8x32xf32>
    %29 = vector.extract_strided_slice %26 {offsets = [0, 64], sizes = [8, 32], strides = [1, 1]} : vector<8x128xf32> to vector<8x32xf32>
    %30 = vector.extract_strided_slice %25 {offsets = [0, 96], sizes = [8, 32], strides = [1, 1]} : vector<8x128xf32> to vector<8x32xf32>
    %31 = arith.mulf %28, %15 : vector<8x32xf32>
    %32 = arith.mulf %27, %29 : vector<8x32xf32>
    %33 = arith.addf %31, %32 : vector<8x32xf32>
    %34 = math.tanh %33 : vector<8x32xf32>
    %35 = arith.mulf %30, %34 : vector<8x32xf32>
    %36 = vector.extract_strided_slice %5 {offsets = [8, 0], sizes = [8, 128], strides = [1, 1]} : vector<64x128xf32> to vector<8x128xf32>
    %cst_26 = arith.constant dense<0.000000e+00> : vector<8x128xf32>
    %37 = tpu.matmul %35, %6, %cst_26 {dimension_numbers = #tpu.dot_dimension_numbers<[1], [0], [0], [1], [0, 0, 1, 1], [], []>} : vector<8x32xf32>, vector<32x128xf32>, vector<8x128xf32> -> vector<8x128xf32>
    %38 = arith.addf %36, %37 : vector<8x128xf32>
    %39 = arith.negf %38 : vector<8x128xf32>
    %40 = math.exp %39 : vector<8x128xf32>
    %cst_27 = arith.constant 1.000000e+00 : f32
    %41 = vector.broadcast %cst_27 : f32 to vector<8x128xf32>
    %42 = arith.addf %41, %40 : vector<8x128xf32>
    %43 = arith.divf %41, %42 : vector<8x128xf32>
    %44 = math.tanh %38 : vector<8x128xf32>
    %45 = vector.extract_strided_slice %43 {offsets = [0, 0], sizes = [8, 32], strides = [1, 1]} : vector<8x128xf32> to vector<8x32xf32>
    %46 = vector.extract_strided_slice %43 {offsets = [0, 32], sizes = [8, 32], strides = [1, 1]} : vector<8x128xf32> to vector<8x32xf32>
    %47 = vector.extract_strided_slice %44 {offsets = [0, 64], sizes = [8, 32], strides = [1, 1]} : vector<8x128xf32> to vector<8x32xf32>
    %48 = vector.extract_strided_slice %43 {offsets = [0, 96], sizes = [8, 32], strides = [1, 1]} : vector<8x128xf32> to vector<8x32xf32>
    %49 = arith.mulf %46, %33 : vector<8x32xf32>
    %50 = arith.mulf %45, %47 : vector<8x32xf32>
    %51 = arith.addf %49, %50 : vector<8x32xf32>
    %52 = math.tanh %51 : vector<8x32xf32>
    %53 = arith.mulf %48, %52 : vector<8x32xf32>
    %cst_28 = arith.constant dense<0.000000e+00> : vector<8x128xf32>
    %54 = tpu.matmul %35, %8, %cst_28 {dimension_numbers = #tpu.dot_dimension_numbers<[1], [0], [0], [1], [0, 0, 1, 1], [], []>} : vector<8x32xf32>, vector<32x128xf32>, vector<8x128xf32> -> vector<8x128xf32>
    %cst_29 = arith.constant dense<0.000000e+00> : vector<8x128xf32>
    %55 = tpu.matmul %13, %7, %cst_29 {dimension_numbers = #tpu.dot_dimension_numbers<[1], [0], [0], [1], [0, 0, 1, 1], [], []>} : vector<8x32xf32>, vector<32x128xf32>, vector<8x128xf32> -> vector<8x128xf32>
    %56 = arith.addf %54, %55 : vector<8x128xf32>
    %57 = vector.broadcast %9 : vector<1x128xf32> to vector<8x128xf32>
    %58 = arith.addf %56, %57 : vector<8x128xf32>
    %59 = arith.negf %58 : vector<8x128xf32>
    %60 = math.exp %59 : vector<8x128xf32>
    %cst_30 = arith.constant 1.000000e+00 : f32
    %61 = vector.broadcast %cst_30 : f32 to vector<8x128xf32>
    %62 = arith.addf %61, %60 : vector<8x128xf32>
    %63 = arith.divf %61, %62 : vector<8x128xf32>
    %64 = math.tanh %58 : vector<8x128xf32>
    %65 = vector.extract_strided_slice %63 {offsets = [0, 0], sizes = [8, 32], strides = [1, 1]} : vector<8x128xf32> to vector<8x32xf32>
    %66 = vector.extract_strided_slice %63 {offsets = [0, 32], sizes = [8, 32], strides = [1, 1]} : vector<8x128xf32> to vector<8x32xf32>
    %67 = vector.extract_strided_slice %64 {offsets = [0, 64], sizes = [8, 32], strides = [1, 1]} : vector<8x128xf32> to vector<8x32xf32>
    %68 = vector.extract_strided_slice %63 {offsets = [0, 96], sizes = [8, 32], strides = [1, 1]} : vector<8x128xf32> to vector<8x32xf32>
    %69 = arith.mulf %66, %17 : vector<8x32xf32>
    %70 = arith.mulf %65, %67 : vector<8x32xf32>
    %71 = arith.addf %69, %70 : vector<8x32xf32>
    %72 = math.tanh %71 : vector<8x32xf32>
    %73 = arith.mulf %68, %72 : vector<8x32xf32>
    %c0_31 = arith.constant 0 : index
    %c0_32 = arith.constant 0 : index
    %74 = vector.load %arg18[%c0_31, %c0_32] : memref<64x32xf32, #tpu.memory_space<vmem>>, vector<8x32xf32>
    tpu.vector_store %arg18[%c0_31, %c0_32], %73 {strides = array<i32>} : memref<64x32xf32, #tpu.memory_space<vmem>>, vector<8x32xf32>,
    %75 = vector.extract_strided_slice %5 {offsets = [16, 0], sizes = [8, 128], strides = [1, 1]} : vector<64x128xf32> to vector<8x128xf32>
    %cst_33 = arith.constant dense<0.000000e+00> : vector<8x128xf32>
    %76 = tpu.matmul %53, %6, %cst_33 {dimension_numbers = #tpu.dot_dimension_numbers<[1], [0], [0], [1], [0, 0, 1, 1], [], []>} : vector<8x32xf32>, vector<32x128xf32>, vector<8x128xf32> -> vector<8x128xf32>
    %77 = arith.addf %75, %76 : vector<8x128xf32>
    %78 = arith.negf %77 : vector<8x128xf32>
    %79 = math.exp %78 : vector<8x128xf32>
    %cst_34 = arith.constant 1.000000e+00 : f32
    %80 = vector.broadcast %cst_34 : f32 to vector<8x128xf32>
    %81 = arith.addf %80, %79 : vector<8x128xf32>
    %82 = arith.divf %80, %81 : vector<8x128xf32>
    %83 = math.tanh %77 : vector<8x128xf32>
    %84 = vector.extract_strided_slice %82 {offsets = [0, 0], sizes = [8, 32], strides = [1, 1]} : vector<8x128xf32> to vector<8x32xf32>
    %85 = vector.extract_strided_slice %82 {offsets = [0, 32], sizes = [8, 32], strides = [1, 1]} : vector<8x128xf32> to vector<8x32xf32>
    %86 = vector.extract_strided_slice %83 {offsets = [0, 64], sizes = [8, 32], strides = [1, 1]} : vector<8x128xf32> to vector<8x32xf32>
    %87 = vector.extract_strided_slice %82 {offsets = [0, 96], sizes = [8, 32], strides = [1, 1]} : vector<8x128xf32> to vector<8x32xf32>
    %88 = arith.mulf %85, %51 : vector<8x32xf32>
    %89 = arith.mulf %84, %86 : vector<8x32xf32>
    %90 = arith.addf %88, %89 : vector<8x32xf32>
    %91 = math.tanh %90 : vector<8x32xf32>
    %92 = arith.mulf %87, %91 : vector<8x32xf32>
    %cst_35 = arith.constant dense<0.000000e+00> : vector<8x128xf32>
    %93 = tpu.matmul %53, %8, %cst_35 {dimension_numbers = #tpu.dot_dimension_numbers<[1], [0], [0], [1], [0, 0, 1, 1], [], []>} : vector<8x32xf32>, vector<32x128xf32>, vector<8x128xf32> -> vector<8x128xf32>
    %cst_36 = arith.constant dense<0.000000e+00> : vector<8x128xf32>
    %94 = tpu.matmul %73, %7, %cst_36 {dimension_numbers = #tpu.dot_dimension_numbers<[1], [0], [0], [1], [0, 0, 1, 1], [], []>} : vector<8x32xf32>, vector<32x128xf32>, vector<8x128xf32> -> vector<8x128xf32>
    %95 = arith.addf %93, %94 : vector<8x128xf32>
    %96 = vector.broadcast %9 : vector<1x128xf32> to vector<8x128xf32>
    %97 = arith.addf %95, %96 : vector<8x128xf32>
    %98 = arith.negf %97 : vector<8x128xf32>
    %99 = math.exp %98 : vector<8x128xf32>
    %cst_37 = arith.constant 1.000000e+00 : f32
    %100 = vector.broadcast %cst_37 : f32 to vector<8x128xf32>
    %101 = arith.addf %100, %99 : vector<8x128xf32>
    %102 = arith.divf %100, %101 : vector<8x128xf32>
    %103 = math.tanh %97 : vector<8x128xf32>
    %104 = vector.extract_strided_slice %102 {offsets = [0, 0], sizes = [8, 32], strides = [1, 1]} : vector<8x128xf32> to vector<8x32xf32>
    %105 = vector.extract_strided_slice %102 {offsets = [0, 32], sizes = [8, 32], strides = [1, 1]} : vector<8x128xf32> to vector<8x32xf32>
    %106 = vector.extract_strided_slice %103 {offsets = [0, 64], sizes = [8, 32], strides = [1, 1]} : vector<8x128xf32> to vector<8x32xf32>
    %107 = vector.extract_strided_slice %102 {offsets = [0, 96], sizes = [8, 32], strides = [1, 1]} : vector<8x128xf32> to vector<8x32xf32>
    %108 = arith.mulf %105, %71 : vector<8x32xf32>
    %109 = arith.mulf %104, %106 : vector<8x32xf32>
    %110 = arith.addf %108, %109 : vector<8x32xf32>
    %111 = math.tanh %110 : vector<8x32xf32>
    %112 = arith.mulf %107, %111 : vector<8x32xf32>
    %c8 = arith.constant 8 : index
    %c0_38 = arith.constant 0 : index
    %113 = vector.load %arg18[%c8, %c0_38] : memref<64x32xf32, #tpu.memory_space<vmem>>, vector<8x32xf32>
    tpu.vector_store %arg18[%c8, %c0_38], %112 {strides = array<i32>} : memref<64x32xf32, #tpu.memory_space<vmem>>, vector<8x32xf32>,
    %114 = vector.extract_strided_slice %5 {offsets = [24, 0], sizes = [8, 128], strides = [1, 1]} : vector<64x128xf32> to vector<8x128xf32>
    %cst_39 = arith.constant dense<0.000000e+00> : vector<8x128xf32>
    %115 = tpu.matmul %92, %6, %cst_39 {dimension_numbers = #tpu.dot_dimension_numbers<[1], [0], [0], [1], [0, 0, 1, 1], [], []>} : vector<8x32xf32>, vector<32x128xf32>, vector<8x128xf32> -> vector<8x128xf32>
    %116 = arith.addf %114, %115 : vector<8x128xf32>
    %117 = arith.negf %116 : vector<8x128xf32>
    %118 = math.exp %117 : vector<8x128xf32>
    %cst_40 = arith.constant 1.000000e+00 : f32
    %119 = vector.broadcast %cst_40 : f32 to vector<8x128xf32>
    %120 = arith.addf %119, %118 : vector<8x128xf32>
    %121 = arith.divf %119, %120 : vector<8x128xf32>
    %122 = math.tanh %116 : vector<8x128xf32>
    %123 = vector.extract_strided_slice %121 {offsets = [0, 0], sizes = [8, 32], strides = [1, 1]} : vector<8x128xf32> to vector<8x32xf32>
    %124 = vector.extract_strided_slice %121 {offsets = [0, 32], sizes = [8, 32], strides = [1, 1]} : vector<8x128xf32> to vector<8x32xf32>
    %125 = vector.extract_strided_slice %122 {offsets = [0, 64], sizes = [8, 32], strides = [1, 1]} : vector<8x128xf32> to vector<8x32xf32>
    %126 = vector.extract_strided_slice %121 {offsets = [0, 96], sizes = [8, 32], strides = [1, 1]} : vector<8x128xf32> to vector<8x32xf32>
    %127 = arith.mulf %124, %90 : vector<8x32xf32>
    %128 = arith.mulf %123, %125 : vector<8x32xf32>
    %129 = arith.addf %127, %128 : vector<8x32xf32>
    %130 = math.tanh %129 : vector<8x32xf32>
    %131 = arith.mulf %126, %130 : vector<8x32xf32>
    %cst_41 = arith.constant dense<0.000000e+00> : vector<8x128xf32>
    %132 = tpu.matmul %92, %8, %cst_41 {dimension_numbers = #tpu.dot_dimension_numbers<[1], [0], [0], [1], [0, 0, 1, 1], [], []>} : vector<8x32xf32>, vector<32x128xf32>, vector<8x128xf32> -> vector<8x128xf32>
    %cst_42 = arith.constant dense<0.000000e+00> : vector<8x128xf32>
    %133 = tpu.matmul %112, %7, %cst_42 {dimension_numbers = #tpu.dot_dimension_numbers<[1], [0], [0], [1], [0, 0, 1, 1], [], []>} : vector<8x32xf32>, vector<32x128xf32>, vector<8x128xf32> -> vector<8x128xf32>
    %134 = arith.addf %132, %133 : vector<8x128xf32>
    %135 = vector.broadcast %9 : vector<1x128xf32> to vector<8x128xf32>
    %136 = arith.addf %134, %135 : vector<8x128xf32>
    %137 = arith.negf %136 : vector<8x128xf32>
    %138 = math.exp %137 : vector<8x128xf32>
    %cst_43 = arith.constant 1.000000e+00 : f32
    %139 = vector.broadcast %cst_43 : f32 to vector<8x128xf32>
    %140 = arith.addf %139, %138 : vector<8x128xf32>
    %141 = arith.divf %139, %140 : vector<8x128xf32>
    %142 = math.tanh %136 : vector<8x128xf32>
    %143 = vector.extract_strided_slice %141 {offsets = [0, 0], sizes = [8, 32], strides = [1, 1]} : vector<8x128xf32> to vector<8x32xf32>
    %144 = vector.extract_strided_slice %141 {offsets = [0, 32], sizes = [8, 32], strides = [1, 1]} : vector<8x128xf32> to vector<8x32xf32>
    %145 = vector.extract_strided_slice %142 {offsets = [0, 64], sizes = [8, 32], strides = [1, 1]} : vector<8x128xf32> to vector<8x32xf32>
    %146 = vector.extract_strided_slice %141 {offsets = [0, 96], sizes = [8, 32], strides = [1, 1]} : vector<8x128xf32> to vector<8x32xf32>
    %147 = arith.mulf %144, %110 : vector<8x32xf32>
    %148 = arith.mulf %143, %145 : vector<8x32xf32>
    %149 = arith.addf %147, %148 : vector<8x32xf32>
    %150 = math.tanh %149 : vector<8x32xf32>
    %151 = arith.mulf %146, %150 : vector<8x32xf32>
    %c16 = arith.constant 16 : index
    %c0_44 = arith.constant 0 : index
    %152 = vector.load %arg18[%c16, %c0_44] : memref<64x32xf32, #tpu.memory_space<vmem>>, vector<8x32xf32>
    tpu.vector_store %arg18[%c16, %c0_44], %151 {strides = array<i32>} : memref<64x32xf32, #tpu.memory_space<vmem>>, vector<8x32xf32>,
    %153 = vector.extract_strided_slice %5 {offsets = [32, 0], sizes = [8, 128], strides = [1, 1]} : vector<64x128xf32> to vector<8x128xf32>
    %cst_45 = arith.constant dense<0.000000e+00> : vector<8x128xf32>
    %154 = tpu.matmul %131, %6, %cst_45 {dimension_numbers = #tpu.dot_dimension_numbers<[1], [0], [0], [1], [0, 0, 1, 1], [], []>} : vector<8x32xf32>, vector<32x128xf32>, vector<8x128xf32> -> vector<8x128xf32>
    %155 = arith.addf %153, %154 : vector<8x128xf32>
    %156 = arith.negf %155 : vector<8x128xf32>
    %157 = math.exp %156 : vector<8x128xf32>
    %cst_46 = arith.constant 1.000000e+00 : f32
    %158 = vector.broadcast %cst_46 : f32 to vector<8x128xf32>
    %159 = arith.addf %158, %157 : vector<8x128xf32>
    %160 = arith.divf %158, %159 : vector<8x128xf32>
    %161 = math.tanh %155 : vector<8x128xf32>
    %162 = vector.extract_strided_slice %160 {offsets = [0, 0], sizes = [8, 32], strides = [1, 1]} : vector<8x128xf32> to vector<8x32xf32>
    %163 = vector.extract_strided_slice %160 {offsets = [0, 32], sizes = [8, 32], strides = [1, 1]} : vector<8x128xf32> to vector<8x32xf32>
    %164 = vector.extract_strided_slice %161 {offsets = [0, 64], sizes = [8, 32], strides = [1, 1]} : vector<8x128xf32> to vector<8x32xf32>
    %165 = vector.extract_strided_slice %160 {offsets = [0, 96], sizes = [8, 32], strides = [1, 1]} : vector<8x128xf32> to vector<8x32xf32>
    %166 = arith.mulf %163, %129 : vector<8x32xf32>
    %167 = arith.mulf %162, %164 : vector<8x32xf32>
    %168 = arith.addf %166, %167 : vector<8x32xf32>
    %169 = math.tanh %168 : vector<8x32xf32>
    %170 = arith.mulf %165, %169 : vector<8x32xf32>
    %cst_47 = arith.constant dense<0.000000e+00> : vector<8x128xf32>
    %171 = tpu.matmul %131, %8, %cst_47 {dimension_numbers = #tpu.dot_dimension_numbers<[1], [0], [0], [1], [0, 0, 1, 1], [], []>} : vector<8x32xf32>, vector<32x128xf32>, vector<8x128xf32> -> vector<8x128xf32>
    %cst_48 = arith.constant dense<0.000000e+00> : vector<8x128xf32>
    %172 = tpu.matmul %151, %7, %cst_48 {dimension_numbers = #tpu.dot_dimension_numbers<[1], [0], [0], [1], [0, 0, 1, 1], [], []>} : vector<8x32xf32>, vector<32x128xf32>, vector<8x128xf32> -> vector<8x128xf32>
    %173 = arith.addf %171, %172 : vector<8x128xf32>
    %174 = vector.broadcast %9 : vector<1x128xf32> to vector<8x128xf32>
    %175 = arith.addf %173, %174 : vector<8x128xf32>
    %176 = arith.negf %175 : vector<8x128xf32>
    %177 = math.exp %176 : vector<8x128xf32>
    %cst_49 = arith.constant 1.000000e+00 : f32
    %178 = vector.broadcast %cst_49 : f32 to vector<8x128xf32>
    %179 = arith.addf %178, %177 : vector<8x128xf32>
    %180 = arith.divf %178, %179 : vector<8x128xf32>
    %181 = math.tanh %175 : vector<8x128xf32>
    %182 = vector.extract_strided_slice %180 {offsets = [0, 0], sizes = [8, 32], strides = [1, 1]} : vector<8x128xf32> to vector<8x32xf32>
    %183 = vector.extract_strided_slice %180 {offsets = [0, 32], sizes = [8, 32], strides = [1, 1]} : vector<8x128xf32> to vector<8x32xf32>
    %184 = vector.extract_strided_slice %181 {offsets = [0, 64], sizes = [8, 32], strides = [1, 1]} : vector<8x128xf32> to vector<8x32xf32>
    %185 = vector.extract_strided_slice %180 {offsets = [0, 96], sizes = [8, 32], strides = [1, 1]} : vector<8x128xf32> to vector<8x32xf32>
    %186 = arith.mulf %183, %149 : vector<8x32xf32>
    %187 = arith.mulf %182, %184 : vector<8x32xf32>
    %188 = arith.addf %186, %187 : vector<8x32xf32>
    %189 = math.tanh %188 : vector<8x32xf32>
    %190 = arith.mulf %185, %189 : vector<8x32xf32>
    %c24 = arith.constant 24 : index
    %c0_50 = arith.constant 0 : index
    %191 = vector.load %arg18[%c24, %c0_50] : memref<64x32xf32, #tpu.memory_space<vmem>>, vector<8x32xf32>
    tpu.vector_store %arg18[%c24, %c0_50], %190 {strides = array<i32>} : memref<64x32xf32, #tpu.memory_space<vmem>>, vector<8x32xf32>,
    %192 = vector.extract_strided_slice %5 {offsets = [40, 0], sizes = [8, 128], strides = [1, 1]} : vector<64x128xf32> to vector<8x128xf32>
    %cst_51 = arith.constant dense<0.000000e+00> : vector<8x128xf32>
    %193 = tpu.matmul %170, %6, %cst_51 {dimension_numbers = #tpu.dot_dimension_numbers<[1], [0], [0], [1], [0, 0, 1, 1], [], []>} : vector<8x32xf32>, vector<32x128xf32>, vector<8x128xf32> -> vector<8x128xf32>
    %194 = arith.addf %192, %193 : vector<8x128xf32>
    %195 = arith.negf %194 : vector<8x128xf32>
    %196 = math.exp %195 : vector<8x128xf32>
    %cst_52 = arith.constant 1.000000e+00 : f32
    %197 = vector.broadcast %cst_52 : f32 to vector<8x128xf32>
    %198 = arith.addf %197, %196 : vector<8x128xf32>
    %199 = arith.divf %197, %198 : vector<8x128xf32>
    %200 = math.tanh %194 : vector<8x128xf32>
    %201 = vector.extract_strided_slice %199 {offsets = [0, 0], sizes = [8, 32], strides = [1, 1]} : vector<8x128xf32> to vector<8x32xf32>
    %202 = vector.extract_strided_slice %199 {offsets = [0, 32], sizes = [8, 32], strides = [1, 1]} : vector<8x128xf32> to vector<8x32xf32>
    %203 = vector.extract_strided_slice %200 {offsets = [0, 64], sizes = [8, 32], strides = [1, 1]} : vector<8x128xf32> to vector<8x32xf32>
    %204 = vector.extract_strided_slice %199 {offsets = [0, 96], sizes = [8, 32], strides = [1, 1]} : vector<8x128xf32> to vector<8x32xf32>
    %205 = arith.mulf %202, %168 : vector<8x32xf32>
    %206 = arith.mulf %201, %203 : vector<8x32xf32>
    %207 = arith.addf %205, %206 : vector<8x32xf32>
    %208 = math.tanh %207 : vector<8x32xf32>
    %209 = arith.mulf %204, %208 : vector<8x32xf32>
    %cst_53 = arith.constant dense<0.000000e+00> : vector<8x128xf32>
    %210 = tpu.matmul %170, %8, %cst_53 {dimension_numbers = #tpu.dot_dimension_numbers<[1], [0], [0], [1], [0, 0, 1, 1], [], []>} : vector<8x32xf32>, vector<32x128xf32>, vector<8x128xf32> -> vector<8x128xf32>
    %cst_54 = arith.constant dense<0.000000e+00> : vector<8x128xf32>
    %211 = tpu.matmul %190, %7, %cst_54 {dimension_numbers = #tpu.dot_dimension_numbers<[1], [0], [0], [1], [0, 0, 1, 1], [], []>} : vector<8x32xf32>, vector<32x128xf32>, vector<8x128xf32> -> vector<8x128xf32>
    %212 = arith.addf %210, %211 : vector<8x128xf32>
    %213 = vector.broadcast %9 : vector<1x128xf32> to vector<8x128xf32>
    %214 = arith.addf %212, %213 : vector<8x128xf32>
    %215 = arith.negf %214 : vector<8x128xf32>
    %216 = math.exp %215 : vector<8x128xf32>
    %cst_55 = arith.constant 1.000000e+00 : f32
    %217 = vector.broadcast %cst_55 : f32 to vector<8x128xf32>
    %218 = arith.addf %217, %216 : vector<8x128xf32>
    %219 = arith.divf %217, %218 : vector<8x128xf32>
    %220 = math.tanh %214 : vector<8x128xf32>
    %221 = vector.extract_strided_slice %219 {offsets = [0, 0], sizes = [8, 32], strides = [1, 1]} : vector<8x128xf32> to vector<8x32xf32>
    %222 = vector.extract_strided_slice %219 {offsets = [0, 32], sizes = [8, 32], strides = [1, 1]} : vector<8x128xf32> to vector<8x32xf32>
    %223 = vector.extract_strided_slice %220 {offsets = [0, 64], sizes = [8, 32], strides = [1, 1]} : vector<8x128xf32> to vector<8x32xf32>
    %224 = vector.extract_strided_slice %219 {offsets = [0, 96], sizes = [8, 32], strides = [1, 1]} : vector<8x128xf32> to vector<8x32xf32>
    %225 = arith.mulf %222, %188 : vector<8x32xf32>
    %226 = arith.mulf %221, %223 : vector<8x32xf32>
    %227 = arith.addf %225, %226 : vector<8x32xf32>
    %228 = math.tanh %227 : vector<8x32xf32>
    %229 = arith.mulf %224, %228 : vector<8x32xf32>
    %c32 = arith.constant 32 : index
    %c0_56 = arith.constant 0 : index
    %230 = vector.load %arg18[%c32, %c0_56] : memref<64x32xf32, #tpu.memory_space<vmem>>, vector<8x32xf32>
    tpu.vector_store %arg18[%c32, %c0_56], %229 {strides = array<i32>} : memref<64x32xf32, #tpu.memory_space<vmem>>, vector<8x32xf32>,
    %231 = vector.extract_strided_slice %5 {offsets = [48, 0], sizes = [8, 128], strides = [1, 1]} : vector<64x128xf32> to vector<8x128xf32>
    %cst_57 = arith.constant dense<0.000000e+00> : vector<8x128xf32>
    %232 = tpu.matmul %209, %6, %cst_57 {dimension_numbers = #tpu.dot_dimension_numbers<[1], [0], [0], [1], [0, 0, 1, 1], [], []>} : vector<8x32xf32>, vector<32x128xf32>, vector<8x128xf32> -> vector<8x128xf32>
    %233 = arith.addf %231, %232 : vector<8x128xf32>
    %234 = arith.negf %233 : vector<8x128xf32>
    %235 = math.exp %234 : vector<8x128xf32>
    %cst_58 = arith.constant 1.000000e+00 : f32
    %236 = vector.broadcast %cst_58 : f32 to vector<8x128xf32>
    %237 = arith.addf %236, %235 : vector<8x128xf32>
    %238 = arith.divf %236, %237 : vector<8x128xf32>
    %239 = math.tanh %233 : vector<8x128xf32>
    %240 = vector.extract_strided_slice %238 {offsets = [0, 0], sizes = [8, 32], strides = [1, 1]} : vector<8x128xf32> to vector<8x32xf32>
    %241 = vector.extract_strided_slice %238 {offsets = [0, 32], sizes = [8, 32], strides = [1, 1]} : vector<8x128xf32> to vector<8x32xf32>
    %242 = vector.extract_strided_slice %239 {offsets = [0, 64], sizes = [8, 32], strides = [1, 1]} : vector<8x128xf32> to vector<8x32xf32>
    %243 = vector.extract_strided_slice %238 {offsets = [0, 96], sizes = [8, 32], strides = [1, 1]} : vector<8x128xf32> to vector<8x32xf32>
    %244 = arith.mulf %241, %207 : vector<8x32xf32>
    %245 = arith.mulf %240, %242 : vector<8x32xf32>
    %246 = arith.addf %244, %245 : vector<8x32xf32>
    %247 = math.tanh %246 : vector<8x32xf32>
    %248 = arith.mulf %243, %247 : vector<8x32xf32>
    %cst_59 = arith.constant dense<0.000000e+00> : vector<8x128xf32>
    %249 = tpu.matmul %209, %8, %cst_59 {dimension_numbers = #tpu.dot_dimension_numbers<[1], [0], [0], [1], [0, 0, 1, 1], [], []>} : vector<8x32xf32>, vector<32x128xf32>, vector<8x128xf32> -> vector<8x128xf32>
    %cst_60 = arith.constant dense<0.000000e+00> : vector<8x128xf32>
    %250 = tpu.matmul %229, %7, %cst_60 {dimension_numbers = #tpu.dot_dimension_numbers<[1], [0], [0], [1], [0, 0, 1, 1], [], []>} : vector<8x32xf32>, vector<32x128xf32>, vector<8x128xf32> -> vector<8x128xf32>
    %251 = arith.addf %249, %250 : vector<8x128xf32>
    %252 = vector.broadcast %9 : vector<1x128xf32> to vector<8x128xf32>
    %253 = arith.addf %251, %252 : vector<8x128xf32>
    %254 = arith.negf %253 : vector<8x128xf32>
    %255 = math.exp %254 : vector<8x128xf32>
    %cst_61 = arith.constant 1.000000e+00 : f32
    %256 = vector.broadcast %cst_61 : f32 to vector<8x128xf32>
    %257 = arith.addf %256, %255 : vector<8x128xf32>
    %258 = arith.divf %256, %257 : vector<8x128xf32>
    %259 = math.tanh %253 : vector<8x128xf32>
    %260 = vector.extract_strided_slice %258 {offsets = [0, 0], sizes = [8, 32], strides = [1, 1]} : vector<8x128xf32> to vector<8x32xf32>
    %261 = vector.extract_strided_slice %258 {offsets = [0, 32], sizes = [8, 32], strides = [1, 1]} : vector<8x128xf32> to vector<8x32xf32>
    %262 = vector.extract_strided_slice %259 {offsets = [0, 64], sizes = [8, 32], strides = [1, 1]} : vector<8x128xf32> to vector<8x32xf32>
    %263 = vector.extract_strided_slice %258 {offsets = [0, 96], sizes = [8, 32], strides = [1, 1]} : vector<8x128xf32> to vector<8x32xf32>
    %264 = arith.mulf %261, %227 : vector<8x32xf32>
    %265 = arith.mulf %260, %262 : vector<8x32xf32>
    %266 = arith.addf %264, %265 : vector<8x32xf32>
    %267 = math.tanh %266 : vector<8x32xf32>
    %268 = arith.mulf %263, %267 : vector<8x32xf32>
    %c40 = arith.constant 40 : index
    %c0_62 = arith.constant 0 : index
    %269 = vector.load %arg18[%c40, %c0_62] : memref<64x32xf32, #tpu.memory_space<vmem>>, vector<8x32xf32>
    tpu.vector_store %arg18[%c40, %c0_62], %268 {strides = array<i32>} : memref<64x32xf32, #tpu.memory_space<vmem>>, vector<8x32xf32>,
    %270 = vector.extract_strided_slice %5 {offsets = [56, 0], sizes = [8, 128], strides = [1, 1]} : vector<64x128xf32> to vector<8x128xf32>
    %cst_63 = arith.constant dense<0.000000e+00> : vector<8x128xf32>
    %271 = tpu.matmul %248, %6, %cst_63 {dimension_numbers = #tpu.dot_dimension_numbers<[1], [0], [0], [1], [0, 0, 1, 1], [], []>} : vector<8x32xf32>, vector<32x128xf32>, vector<8x128xf32> -> vector<8x128xf32>
    %272 = arith.addf %270, %271 : vector<8x128xf32>
    %273 = arith.negf %272 : vector<8x128xf32>
    %274 = math.exp %273 : vector<8x128xf32>
    %cst_64 = arith.constant 1.000000e+00 : f32
    %275 = vector.broadcast %cst_64 : f32 to vector<8x128xf32>
    %276 = arith.addf %275, %274 : vector<8x128xf32>
    %277 = arith.divf %275, %276 : vector<8x128xf32>
    %278 = math.tanh %272 : vector<8x128xf32>
    %279 = vector.extract_strided_slice %277 {offsets = [0, 0], sizes = [8, 32], strides = [1, 1]} : vector<8x128xf32> to vector<8x32xf32>
    %280 = vector.extract_strided_slice %277 {offsets = [0, 32], sizes = [8, 32], strides = [1, 1]} : vector<8x128xf32> to vector<8x32xf32>
    %281 = vector.extract_strided_slice %278 {offsets = [0, 64], sizes = [8, 32], strides = [1, 1]} : vector<8x128xf32> to vector<8x32xf32>
    %282 = vector.extract_strided_slice %277 {offsets = [0, 96], sizes = [8, 32], strides = [1, 1]} : vector<8x128xf32> to vector<8x32xf32>
    %283 = arith.mulf %280, %246 : vector<8x32xf32>
    %284 = arith.mulf %279, %281 : vector<8x32xf32>
    %285 = arith.addf %283, %284 : vector<8x32xf32>
    %286 = math.tanh %285 : vector<8x32xf32>
    %287 = arith.mulf %282, %286 : vector<8x32xf32>
    %cst_65 = arith.constant dense<0.000000e+00> : vector<8x128xf32>
    %288 = tpu.matmul %248, %8, %cst_65 {dimension_numbers = #tpu.dot_dimension_numbers<[1], [0], [0], [1], [0, 0, 1, 1], [], []>} : vector<8x32xf32>, vector<32x128xf32>, vector<8x128xf32> -> vector<8x128xf32>
    %cst_66 = arith.constant dense<0.000000e+00> : vector<8x128xf32>
    %289 = tpu.matmul %268, %7, %cst_66 {dimension_numbers = #tpu.dot_dimension_numbers<[1], [0], [0], [1], [0, 0, 1, 1], [], []>} : vector<8x32xf32>, vector<32x128xf32>, vector<8x128xf32> -> vector<8x128xf32>
    %290 = arith.addf %288, %289 : vector<8x128xf32>
    %291 = vector.broadcast %9 : vector<1x128xf32> to vector<8x128xf32>
    %292 = arith.addf %290, %291 : vector<8x128xf32>
    %293 = arith.negf %292 : vector<8x128xf32>
    %294 = math.exp %293 : vector<8x128xf32>
    %cst_67 = arith.constant 1.000000e+00 : f32
    %295 = vector.broadcast %cst_67 : f32 to vector<8x128xf32>
    %296 = arith.addf %295, %294 : vector<8x128xf32>
    %297 = arith.divf %295, %296 : vector<8x128xf32>
    %298 = math.tanh %292 : vector<8x128xf32>
    %299 = vector.extract_strided_slice %297 {offsets = [0, 0], sizes = [8, 32], strides = [1, 1]} : vector<8x128xf32> to vector<8x32xf32>
    %300 = vector.extract_strided_slice %297 {offsets = [0, 32], sizes = [8, 32], strides = [1, 1]} : vector<8x128xf32> to vector<8x32xf32>
    %301 = vector.extract_strided_slice %298 {offsets = [0, 64], sizes = [8, 32], strides = [1, 1]} : vector<8x128xf32> to vector<8x32xf32>
    %302 = vector.extract_strided_slice %297 {offsets = [0, 96], sizes = [8, 32], strides = [1, 1]} : vector<8x128xf32> to vector<8x32xf32>
    %303 = arith.mulf %300, %266 : vector<8x32xf32>
    %304 = arith.mulf %299, %301 : vector<8x32xf32>
    %305 = arith.addf %303, %304 : vector<8x32xf32>
    %306 = math.tanh %305 : vector<8x32xf32>
    %307 = arith.mulf %302, %306 : vector<8x32xf32>
    %c48 = arith.constant 48 : index
    %c0_68 = arith.constant 0 : index
    %308 = vector.load %arg18[%c48, %c0_68] : memref<64x32xf32, #tpu.memory_space<vmem>>, vector<8x32xf32>
    tpu.vector_store %arg18[%c48, %c0_68], %307 {strides = array<i32>} : memref<64x32xf32, #tpu.memory_space<vmem>>, vector<8x32xf32>,
    %cst_69 = arith.constant dense<0.000000e+00> : vector<8x128xf32>
    %309 = tpu.matmul %287, %8, %cst_69 {dimension_numbers = #tpu.dot_dimension_numbers<[1], [0], [0], [1], [0, 0, 1, 1], [], []>} : vector<8x32xf32>, vector<32x128xf32>, vector<8x128xf32> -> vector<8x128xf32>
    %cst_70 = arith.constant dense<0.000000e+00> : vector<8x128xf32>
    %310 = tpu.matmul %307, %7, %cst_70 {dimension_numbers = #tpu.dot_dimension_numbers<[1], [0], [0], [1], [0, 0, 1, 1], [], []>} : vector<8x32xf32>, vector<32x128xf32>, vector<8x128xf32> -> vector<8x128xf32>
    %311 = arith.addf %309, %310 : vector<8x128xf32>
    %312 = vector.broadcast %9 : vector<1x128xf32> to vector<8x128xf32>
    %313 = arith.addf %311, %312 : vector<8x128xf32>
    %314 = arith.negf %313 : vector<8x128xf32>
    %315 = math.exp %314 : vector<8x128xf32>
    %cst_71 = arith.constant 1.000000e+00 : f32
    %316 = vector.broadcast %cst_71 : f32 to vector<8x128xf32>
    %317 = arith.addf %316, %315 : vector<8x128xf32>
    %318 = arith.divf %316, %317 : vector<8x128xf32>
    %319 = math.tanh %313 : vector<8x128xf32>
    %320 = vector.extract_strided_slice %318 {offsets = [0, 0], sizes = [8, 32], strides = [1, 1]} : vector<8x128xf32> to vector<8x32xf32>
    %321 = vector.extract_strided_slice %318 {offsets = [0, 32], sizes = [8, 32], strides = [1, 1]} : vector<8x128xf32> to vector<8x32xf32>
    %322 = vector.extract_strided_slice %319 {offsets = [0, 64], sizes = [8, 32], strides = [1, 1]} : vector<8x128xf32> to vector<8x32xf32>
    %323 = vector.extract_strided_slice %318 {offsets = [0, 96], sizes = [8, 32], strides = [1, 1]} : vector<8x128xf32> to vector<8x32xf32>
    %324 = arith.mulf %321, %305 : vector<8x32xf32>
    %325 = arith.mulf %320, %322 : vector<8x32xf32>
    %326 = arith.addf %324, %325 : vector<8x32xf32>
    %327 = math.tanh %326 : vector<8x32xf32>
    %328 = arith.mulf %323, %327 : vector<8x32xf32>
    %c56 = arith.constant 56 : index
    %c0_72 = arith.constant 0 : index
    %329 = vector.load %arg18[%c56, %c0_72] : memref<64x32xf32, #tpu.memory_space<vmem>>, vector<8x32xf32>
    tpu.vector_store %arg18[%c56, %c0_72], %328 {strides = array<i32>} : memref<64x32xf32, #tpu.memory_space<vmem>>, vector<8x32xf32>,
    %c0_73 = arith.constant 0 : index
    %c0_74 = arith.constant 0 : index
    %c0_75 = arith.constant 0 : index
    %330 = vector.load %arg16[%c0_73, %c0_74, %c0_75] : memref<2x8x32xf32, #tpu.memory_space<vmem>>, vector<1x8x32xf32>
    %331 = vector.shape_cast %330 : vector<1x8x32xf32> to vector<8x32xf32>
    %332 = vector.shape_cast %287 : vector<8x32xf32> to vector<1x8x32xf32>
    tpu.vector_store %arg16[%c0_73, %c0_74, %c0_75], %332 {strides = array<i32>} : memref<2x8x32xf32, #tpu.memory_space<vmem>>, vector<1x8x32xf32>,
    %c0_76 = arith.constant 0 : index
    %c0_77 = arith.constant 0 : index
    %c0_78 = arith.constant 0 : index
    %333 = vector.load %arg17[%c0_76, %c0_77, %c0_78] : memref<2x8x32xf32, #tpu.memory_space<vmem>>, vector<1x8x32xf32>
    %334 = vector.shape_cast %333 : vector<1x8x32xf32> to vector<8x32xf32>
    %335 = vector.shape_cast %285 : vector<8x32xf32> to vector<1x8x32xf32>
    tpu.vector_store %arg17[%c0_76, %c0_77, %c0_78], %335 {strides = array<i32>} : memref<2x8x32xf32, #tpu.memory_space<vmem>>, vector<1x8x32xf32>,
    %c1_79 = arith.constant 1 : index
    %c0_80 = arith.constant 0 : index
    %c0_81 = arith.constant 0 : index
    %336 = vector.load %arg16[%c1_79, %c0_80, %c0_81] : memref<2x8x32xf32, #tpu.memory_space<vmem>>, vector<1x8x32xf32>
    %337 = vector.shape_cast %336 : vector<1x8x32xf32> to vector<8x32xf32>
    %338 = vector.shape_cast %328 : vector<8x32xf32> to vector<1x8x32xf32>
    tpu.vector_store %arg16[%c1_79, %c0_80, %c0_81], %338 {strides = array<i32>} : memref<2x8x32xf32, #tpu.memory_space<vmem>>, vector<1x8x32xf32>,
    %c1_82 = arith.constant 1 : index
    %c0_83 = arith.constant 0 : index
    %c0_84 = arith.constant 0 : index
    %339 = vector.load %arg17[%c1_82, %c0_83, %c0_84] : memref<2x8x32xf32, #tpu.memory_space<vmem>>, vector<1x8x32xf32>
    %340 = vector.shape_cast %339 : vector<1x8x32xf32> to vector<8x32xf32>
    %341 = vector.shape_cast %326 : vector<8x32xf32> to vector<1x8x32xf32>
    tpu.vector_store %arg17[%c1_82, %c0_83, %c0_84], %341 {strides = array<i32>} : memref<2x8x32xf32, #tpu.memory_space<vmem>>, vector<1x8x32xf32>,
    %c0_85 = arith.constant 0 : index
    %c0_86 = arith.constant 0 : index
    %342 = vector.load %arg18[%c0_85, %c0_86] : memref<64x32xf32, #tpu.memory_space<vmem>>, vector<64x32xf32>
    %c0_87 = arith.constant 0 : index
    %c0_88 = arith.constant 0 : index
    %343 = vector.load %arg9[%c0_87, %c0_88] : memref<32x32xf32, #tpu.memory_space<vmem>>, vector<32x32xf32>
    %cst_89 = arith.constant dense<0.000000e+00> : vector<64x32xf32>
    %344 = tpu.matmul %342, %343, %cst_89 {dimension_numbers = #tpu.dot_dimension_numbers<[1], [0], [0], [1], [0, 0, 1, 1], [], []>} : vector<64x32xf32>, vector<32x32xf32>, vector<64x32xf32> -> vector<64x32xf32>
    %c0_90 = arith.constant 0 : index
    %c0_91 = arith.constant 0 : index
    %345 = vector.load %arg10[%c0_90, %c0_91] : memref<1x32xf32, #tpu.memory_space<vmem>>, vector<1x32xf32>
    %346 = vector.broadcast %345 : vector<1x32xf32> to vector<64x32xf32>
    %347 = arith.addf %344, %346 : vector<64x32xf32>
    %cst_92 = arith.constant 0.000000e+00 : f32
    %348 = vector.broadcast %cst_92 : f32 to vector<64x32xf32>
    %349 = arith.maximumf %347, %348 : vector<64x32xf32>
    %c0_93 = arith.constant 0 : index
    %c0_94 = arith.constant 0 : index
    %350 = vector.load %arg11[%c0_93, %c0_94] : memref<32x32xf32, #tpu.memory_space<vmem>>, vector<32x32xf32>
    %cst_95 = arith.constant dense<0.000000e+00> : vector<64x32xf32>
    %351 = tpu.matmul %349, %350, %cst_95 {dimension_numbers = #tpu.dot_dimension_numbers<[1], [0], [0], [1], [0, 0, 1, 1], [], []>} : vector<64x32xf32>, vector<32x32xf32>, vector<64x32xf32> -> vector<64x32xf32>
    %c0_96 = arith.constant 0 : index
    %c0_97 = arith.constant 0 : index
    %352 = vector.load %arg12[%c0_96, %c0_97] : memref<1x32xf32, #tpu.memory_space<vmem>>, vector<1x32xf32>
    %353 = vector.broadcast %352 : vector<1x32xf32> to vector<64x32xf32>
    %354 = arith.addf %351, %353 : vector<64x32xf32>
    %cst_98 = arith.constant 0.000000e+00 : f32
    %355 = vector.broadcast %cst_98 : f32 to vector<64x32xf32>
    %356 = arith.maximumf %354, %355 : vector<64x32xf32>
    %c0_99 = arith.constant 0 : index
    %c0_100 = arith.constant 0 : index
    %357 = vector.load %arg13[%c0_99, %c0_100] : memref<32x16xf32, #tpu.memory_space<vmem>>, vector<32x16xf32>
    %cst_101 = arith.constant dense<0.000000e+00> : vector<64x16xf32>
    %358 = tpu.matmul %356, %357, %cst_101 {dimension_numbers = #tpu.dot_dimension_numbers<[1], [0], [0], [1], [0, 0, 1, 1], [], []>} : vector<64x32xf32>, vector<32x16xf32>, vector<64x16xf32> -> vector<64x16xf32>
    %c0_102 = arith.constant 0 : index
    %c0_103 = arith.constant 0 : index
    %359 = vector.load %arg14[%c0_102, %c0_103] : memref<1x16xf32, #tpu.memory_space<vmem>>, vector<1x16xf32>
    %360 = vector.broadcast %359 : vector<1x16xf32> to vector<64x16xf32>
    %361 = arith.addf %358, %360 : vector<64x16xf32>
    %c0_104 = arith.constant 0 : index
    %c0_105 = arith.constant 0 : index
    %362 = vector.load %arg15[%c0_104, %c0_105] : memref<64x16xf32, #tpu.memory_space<vmem>>, vector<64x16xf32>
    tpu.vector_store %arg15[%c0_104, %c0_105], %361 {strides = array<i32>} : memref<64x16xf32, #tpu.memory_space<vmem>>, vector<64x16xf32>,
    return
  }
}

</mosaic_0001>

<bundles_post_ra>
// kernel: model_forward.1
= control target key start
LH: loop header
LB: loop body
LE: loop exit
PB: predicated region body
PF: predicated region fallthrough
CT: control target
= control target key end

     0   :  { %s4841_s0 = inlined_call_operand.hbm [shape: f32[64,8], index: 0, kind: input, shape index: {}]   ;;  %s4842_s1 = inlined_call_operand.hbm [shape: f32[2,8,32], index: 1, kind: input, shape index: {}]   ;;  %s4843_s2 = inlined_call_operand.hbm [shape: f32[2,8,32], index: 2, kind: input, shape index: {}]   ;;  %s4844_s3 = inlined_call_operand.hbm [shape: f32[8,128], index: 3, kind: input, shape index: {}]   ;;  %s4845_s4 = inlined_call_operand.vmem [shape: f32[32,128], index: 4, kind: input, shape index: {}]   ;;  %s4846_s5 = inlined_call_operand.vmem [shape: f32[1,128], index: 5, kind: input, shape index: {}]   ;;  %s4847_s6 = inlined_call_operand.vmem [shape: f32[32,128], index: 6, kind: input, shape index: {}]   ;;  %s4848_s7 = inlined_call_operand.hbm [shape: f32[32,128], index: 7, kind: input, shape index: {}]   ;;  %s4849_s8 = inlined_call_operand.vmem [shape: f32[1,128], index: 8, kind: input, shape index: {}]   ;;  %s4850_s9 = inlined_call_operand.hbm [shape: f32[32,32], index: 9, kind: input, shape index: {}]   ;;  %s4851_s10 = inlined_call_operand.hbm [shape: f32[1,32], index: 10, kind: input, shape index: {}]   ;;  %s4852_s11 = inlined_call_operand.hbm [shape: f32[32,32], index: 11, kind: input, shape index: {}]   ;;  %s4853_s12 = inlined_call_operand.hbm [shape: f32[1,32], index: 12, kind: input, shape index: {}]   ;;  %s4854_s13 = inlined_call_operand.vmem [shape: f32[32,16], index: 13, kind: input, shape index: {}]   ;;  %s4855_s14 = inlined_call_operand.hbm [shape: f32[1,16], index: 14, kind: input, shape index: {}]   ;;  %s4856_s15 = inlined_call_operand.hbm [shape: f32[64,16], index: 15, kind: output, shape index: {0}]   ;;  %s4857_s16 = inlined_call_operand.hbm [shape: f32[2,8,32], index: 16, kind: output, shape index: {1}]   ;;  %s4858_s17 = inlined_call_operand.hbm [shape: f32[2,8,32], index: 17, kind: output, shape index: {2}]  }
   0x1   :  { %4859 = sst [smem:[#allocation32_spill]] %s4841_s0 }
   0x2   :  { %4860 = sst [smem:[#allocation33_spill]] %s4842_s1 }
   0x3   :  { %23 = vsyncpa [#allocation4], 0 }
   0x4   :  { %24 = vsyncpa [#allocation7], 0 }
   0x5   :  { %25 = vsyncpa [#allocation10], 0 }
   0x6   :  { %26 = vsyncpa [#allocation13], 0 }
   0x7   :  { %27 = vsyncpa [#allocation16], 0 }
   0x8   :  { %28 = vsyncpa [#allocation19], 0 }
   0x9   :  { %29 = vsyncpa [#allocation5], 0 }
   0xa   :  { %30 = vsyncpa [#allocation22], 0  ;;  %s4084_s24 = smov [#allocation6]   ;;  %s4085_s26 = smov [#allocation9]  }
   0xb   :  { %s48_s25 = sshll.u32 %s4084_s24, 4  ;;  %s73_s27 = sshll.u32 %s4085_s26, 4  ;;  %s49_s25 = int_to_ptr.vmem [resolvable:$true] %s48_s25  ;;  %s74_s27 = int_to_ptr.vmem [resolvable:$true] %s73_s27 }
   0xc   :  { %s3816_s28 = scalar_lea.vmem %s49_s25, 256  ;;  %p3821_p1 = scmp.lt.s32.totalorder %s49_s25, %s49_s25 }
   0xd   :  { %p3817_p0 = scmp.ne.s32.totalorder %s49_s25, %s3816_s28  ;;  %p3822_p2 = scmp.lt.s32.totalorder %s3816_s28, %s3816_s28 }
   0xf   :  { %p3823_p3 = por %p3822_p2, %p3821_p1 }
  0x11   :  { %p3824_p4 = pnand %p3823_p3, %p3817_p0 }
  0x13   :  { %3827 = shalt.err (!%p3824_p4)
}
  0x14   :  { %s4086_s29 = smov 128   ;;  %s4087_s0 = smov 8  }
  0x15   :  { %s4861_s19 = sld [smem:[#allocation33_spill]]  ;;  %s3836_s1 = scalar_lea.vmem %s74_s27, 128 }
  0x16   :  { %p3837_p5 = scmp.ne.s32.totalorder %s74_s27, %s3836_s1  ;;  %p3841_p6 = scmp.lt.s32.totalorder %s74_s27, %s74_s27 }
  0x17   :  { %p3842_p7 = scmp.lt.s32.totalorder %s3836_s1, %s3836_s1 }
  0x19   :  { %p3843_p8 = por %p3842_p7, %p3841_p6 }
  0x1b   :  { %54 = dma.hbm_to_vmem [thread:$0]  %s4861_s19, 256, %s49_s25, [#allocation7], %s4086_s29, %s4086_s29, %s4087_s0  }
  0x1c   :  { %p3844_p9 = pnand %p3843_p8, %p3837_p5 }
  0x1e   :  { %3847 = shalt.err (!%p3844_p9)
}
  0x1f   :  { %76 = dma.hbm_to_vmem [thread:$0]  %s4844_s3, 128, %s74_s27, [#allocation10]  }
  0x20   :  { %s4088_s22 = smov [#allocation12]   ;;  %s4089_s24 = smov [#allocation15]  }
  0x21   :  { %s102_s23 = sshll.u32 %s4088_s22, 4  ;;  %s124_s26 = sshll.u32 %s4089_s24, 4  ;;  %s103_s23 = int_to_ptr.vmem [resolvable:$true] %s102_s23  ;;  %s125_s26 = int_to_ptr.vmem [resolvable:$true] %s124_s26 }
  0x22   :  { %s3856_s28 = scalar_lea.vmem %s103_s23, 512  ;;  %p3861_p11 = scmp.lt.s32.totalorder %s103_s23, %s103_s23 }
  0x23   :  { %p3857_p10 = scmp.ne.s32.totalorder %s103_s23, %s3856_s28  ;;  %p3862_p12 = scmp.lt.s32.totalorder %s3856_s28, %s3856_s28 }
  0x25   :  { %p3863_p13 = por %p3862_p12, %p3861_p11 }
  0x27   :  { %p3864_p0 = pnand %p3863_p13, %p3857_p10 }
  0x29   :  { %3867 = shalt.err (!%p3864_p0)
}
  0x2a   :  { %108 = dma.hbm_to_vmem [thread:$0]  %s4850_s9, 512, %s103_s23, [#allocation13], %s4086_s29, %s4086_s29, %s4087_s0  }
  0x2b   :  { %s3876_s3 = scalar_lea.vmem %s125_s26, 512  ;;  %p3881_p2 = scmp.lt.s32.totalorder %s125_s26, %s125_s26 }
  0x2c   :  { %p3877_p1 = scmp.ne.s32.totalorder %s125_s26, %s3876_s3  ;;  %p3882_p3 = scmp.lt.s32.totalorder %s3876_s3, %s3876_s3 }
  0x2e   :  { %p3883_p4 = por %p3882_p3, %p3881_p2 }
  0x30   :  { %p3884_p5 = pnand %p3883_p4, %p3877_p1 }
  0x32   :  { %3887 = shalt.err (!%p3884_p5)
}
  0x33   :  { %130 = dma.hbm_to_vmem [thread:$0]  %s4852_s11, 512, %s125_s26, [#allocation16], %s4086_s29, %s4086_s29, %s4087_s0  }
  0x34   :  { %s4090_s19 = smov [#allocation3]   ;;  %s4091_s20 = smov [#allocation8]  }
  0x35   :  { %s36_s1 = sshll.u32 %s4090_s19, 4  ;;  %s60_s21 = sshll.u32 %s4091_s20, 4  ;;  %s37_s1 = int_to_ptr.vmem [resolvable:$true] %s36_s1  ;;  %s61_s21 = int_to_ptr.vmem [resolvable:$true] %s60_s21 }
  0x36   :  { %s3896_s9 = scalar_lea.vmem %s37_s1, 1024  ;;  %p3901_p7 = scmp.lt.s32.totalorder %s37_s1, %s37_s1 }
  0x37   :  { %p3897_p6 = scmp.ne.s32.totalorder %s37_s1, %s3896_s9  ;;  %p3902_p8 = scmp.lt.s32.totalorder %s3896_s9, %s3896_s9 }
  0x39   :  { %p3903_p9 = por %p3902_p8, %p3901_p7 }
  0x3b   :  { %p3904_p10 = pnand %p3903_p9, %p3897_p6 }
  0x3d   :  { %3907 = shalt.err (!%p3904_p10)
}
  0x3e   :  { %s4862_s24 = sld [smem:[#allocation32_spill]]  ;;  %s3916_s11 = scalar_lea.vmem %s61_s21, 256 }
  0x3f   :  { %p3917_p11 = scmp.ne.s32.totalorder %s61_s21, %s3916_s11  ;;  %p3921_p12 = scmp.lt.s32.totalorder %s61_s21, %s61_s21 }
  0x40   :  { %p3922_p13 = scmp.lt.s32.totalorder %s3916_s11, %s3916_s11 }
  0x42   :  { %p3923_p0 = por %p3922_p13, %p3921_p12 }
  0x44   :  { %42 = dma.hbm_to_vmem [thread:$0]  %s4862_s24, 1024, %s37_s1, [#allocation4], %s4086_s29, %s4086_s29, %s4087_s0  }
  0x45   :  { %p3924_p1 = pnand %p3923_p0, %p3917_p11 }
  0x47   :  { %3927 = shalt.err (!%p3924_p1)
}
  0x48   :  { %66 = dma.hbm_to_vmem [thread:$0]  %s4843_s2, 256, %s61_s21, [#allocation7], %s4086_s29, %s4086_s29, %s4087_s0  }
  0x49   :  { %s4092_s25 = smov [#allocation11]   ;;  %s4093_s3 = smov [#allocation14]  }
  0x4a   :  { %s88_s30 = sshll.u32 %s4092_s25, 4  ;;  %s115_s27 = sshll.u32 %s4093_s3, 4  ;;  %s89_s30 = int_to_ptr.vmem [resolvable:$true] %s88_s30  ;;  %s116_s27 = int_to_ptr.vmem [resolvable:$true] %s115_s27 }
  0x4b   :  { %s3936_s18 = scalar_lea.vmem %s89_s30, 512  ;;  %p3941_p3 = scmp.lt.s32.totalorder %s89_s30, %s89_s30 }
  0x4c   :  { %p3937_p2 = scmp.ne.s32.totalorder %s89_s30, %s3936_s18  ;;  %p3942_p4 = scmp.lt.s32.totalorder %s3936_s18, %s3936_s18 }
  0x4e   :  { %p3943_p5 = por %p3942_p4, %p3941_p3 }
  0x50   :  { %p3944_p6 = pnand %p3943_p5, %p3937_p2 }
  0x52   :  { %3947 = shalt.err (!%p3944_p6)
}
  0x53   :  { %94 = dma.hbm_to_vmem [thread:$0]  %s4848_s7, 512, %s89_s30, [#allocation10], %s4086_s29, %s4086_s29, %s4087_s0  }
  0x54   :  { %s3956_s2 = scalar_lea.vmem %s116_s27, 16  ;;  %s3960_s20 = scalar_lea.vmem %s116_s27, 32 }
  0x55   :  { %p3957_p7 = scmp.ne.s32.totalorder %s116_s27, %s3956_s2  ;;  %p3961_p8 = scmp.lt.s32.totalorder %s116_s27, %s116_s27 }
  0x56   :  { %p3962_p9 = scmp.lt.s32.totalorder %s3960_s20, %s3956_s2 }
  0x58   :  { %p3963_p10 = por %p3962_p9, %p3961_p8 }
  0x5a   :  { %p3964_p11 = pnand %p3963_p10, %p3957_p7 }
  0x5c   :  { %3967 = shalt.err (!%p3964_p11)
}
  0x5d   :  { %118 = dma.hbm_to_vmem [thread:$0]  %s4851_s10, 16, %s116_s27, [#allocation13]  }
  0x5e   :  { %s4094_s22 = smov [#allocation17]   ;;  %s4095_s24 = smov [#allocation18]  }
  0x5f   :  { %s137_s23 = sshll.u32 %s4094_s22, 4  ;;  %s149_s11 = sshll.u32 %s4095_s24, 4  ;;  %s138_s23 = int_to_ptr.vmem [resolvable:$true] %s137_s23  ;;  %s150_s11 = int_to_ptr.vmem [resolvable:$true] %s149_s11 }
  0x60   :  { %s3976_s26 = scalar_lea.vmem %s138_s23, 16  ;;  %s3980_s7 = scalar_lea.vmem %s138_s23, 32 }
  0x61   :  { %p3977_p12 = scmp.ne.s32.totalorder %s138_s23, %s3976_s26  ;;  %p3981_p13 = scmp.lt.s32.totalorder %s138_s23, %s138_s23 }
  0x62   :  { %p3982_p0 = scmp.lt.s32.totalorder %s3980_s7, %s3976_s26 }
  0x64   :  { %p3983_p1 = por %p3982_p0, %p3981_p13 }
  0x66   :  { %p3984_p2 = pnand %p3983_p1, %p3977_p12 }
  0x68   :  { %3987 = shalt.err (!%p3984_p2)
}
  0x69   :  { %140 = dma.hbm_to_vmem [thread:$0]  %s4853_s12, 16, %s138_s23, [#allocation16]  }
  0x6a   :  { %s3996_s30 = scalar_lea.vmem %s150_s11, 16  ;;  %s4000_s10 = scalar_lea.vmem %s150_s11, 32 }
  0x6b   :  { %p3997_p3 = scmp.ne.s32.totalorder %s150_s11, %s3996_s30  ;;  %p4001_p4 = scmp.lt.s32.totalorder %s150_s11, %s150_s11 }
  0x6c   :  { %p4002_p5 = scmp.lt.s32.totalorder %s4000_s10, %s3996_s30 }
  0x6e   :  { %p4003_p6 = por %p4002_p5, %p4001_p4 }
  0x70   :  { %p4004_p7 = pnand %p4003_p6, %p3997_p3 }
  0x72   :  { %4007 = shalt.err (!%p4004_p7)
}
  0x73   :  { %152 = dma.hbm_to_vmem [thread:$0]  %s4855_s14, 16, %s150_s11, [#allocation19]  }
  0x74   :  { %4068 = dma.done.wait [#allocation4], 1024  }
  0x75   :  { %4069 = vsyncadd [#allocation4], 4294966272 }
  0x76   :  { %4070 = dma.done.wait [#allocation7], 512  }
  0x77   :  { %4071 = vsyncadd [#allocation7], 4294966784 }
  0x78   :  { %4072 = dma.done.wait [#allocation10], 640  }
  0x79   :  { %4073 = vsyncadd [#allocation10], 4294966656 }
  0x7a   :  { %4074 = dma.done.wait [#allocation13], 528  }
  0x7b   :  { %4075 = vsyncadd [#allocation13], 4294966768 }
  0x7c   :  { %4076 = dma.done.wait [#allocation16], 528  }
  0x7d   :  { %4077 = vsyncadd [#allocation16], 4294966768 }
  0x7e   :  { %4078 = dma.done.wait [#allocation19], 16  }
  0x7f   :  { %4079 = vsyncadd [#allocation19], 4294967280  ;;  %vm199_vm0 = vcmask 64512   ;;  %v191_v0 = vld [vmem:[#allocation9] sm:$0xff]  ;;  %v188_v2 = vld [vmem:[#allocation3 + $0x28] sm:$0xff]  ;;  %v4096_v5 = vmov 0.0  }
  0x80   :  { %v187_v1 = vld [vmem:[#allocation3 + $0x20] sm:$0xff]  ;;  %3644 = vmatprep.subr.mxu1 %v191_v0  ;;  %v4246_v3 = vld [vmem:[%s4845_s4 + $0x18] sm:$0xff]  ;;  %3306 = vmatprep.subr.mxu0 %v191_v0  ;;  %v184_v6 = vld [vmem:[#allocation3 + $0x8] sm:$0xff]  ;;  %vm4097_vm1 = vmmov 0   ;;  %vm348_vm2 = vcmask 261120   ;;  %s4098_s23 = smov 64  }
  0x81   :  { %3314 = vmatprep.mubr.msk.f32.mxu1 %vm199_vm0, %v187_v1  ;;  %3645 = vmatpush3.msra.mxu1 %v191_v0  ;;  %v183_v4 = vld [vmem:[#allocation3] sm:$0xff]  ;;  %v189_v7 = vld [vmem:[#allocation3 + $0x30] sm:$0xff]  ;;  %v190_v9 = vld [vmem:[#allocation3 + $0x38] sm:$0xff]  ;;  %s4099_s24 = smov 32   ;;  %vm3002_vm3 = vcmask 130048  }
  0x82   :  { %3315 = vmatmul.mubr.msk.f32.vlgmr.msra.gmra.mxu1 %vm199_vm0, %v188_v2  ;;  %3320 = vmatprep.subr.mxu1 %v4096_v5  ;;  %v4254_v8 = vld [vmem:[%s4845_s4 + $0x10] sm:$0xff]  ;;  %v4263_v10 = vld [vmem:[%s4845_s4 + $0x8] sm:$0xff]  ;;  %v4272_v11 = vld [vmem:[%s4845_s4] sm:$0xff] }
  0x83   :  { %3321 = vmatpush3.msra.mxu1 %v4246_v3  ;;  %3307 = vmatpush3.msra.mxu0 %v191_v0  ;;  %v342_v12 = vld [vmem:[#allocation6] sm:$0xff]  ;;  %v345_v25 = vld [vmem:[#allocation8] sm:$0xff]  ;;  %v4318_v39 = vld [vmem:[#allocation11 + $0x10] sm:$0xff] }
  0x84   :  { %3308 = vmatprep.mubr.msk.f32.mxu0 %vm199_vm0, %v183_v4  ;;  %3322 = vmatprep.subr.mxu1 %v4096_v5  ;;  %v4302_v18 = vld [vmem:[%s4846_s5] ss:$0 sm:$0xff]  ;;  %v185_v38 = vld [vmem:[#allocation3 + $0x10] sm:$0xff]  ;;  %v186_v40 = vld [vmem:[#allocation3 + $0x18] sm:$0xff] }
  0x85   :  { %3309 = vmatmul.mubr.msk.f32.vlgmr.msra.gmra.mxu0 %vm199_vm0, %v184_v6  ;;  %3317 = vmatprep.mubr.msk.f32.mxu1 %vm199_vm0, %v189_v7  ;;  %v4313_v36 = vld [vmem:[#allocation11 + $0x18] sm:$0xff]  ;;  %v4324_v41 = vld [vmem:[#allocation11 + $0x8] sm:$0xff]  ;;  %v4330_v42 = vld [vmem:[#allocation11] sm:$0xff] }
  0x86   :  { %3323 = vmatpush3.msra.mxu1 %v4254_v8  ;;  %3342 = vmatprep.subr.mxu0 %v4096_v5  ;;  %v344_v43 = vld [vmem:[#allocation6 + $0x8] sm:$0xff]  ;;  %v4349_v46 = vld [vmem:[%s4847_s6 + $0x18] sm:$0xff]  ;;  %v4355_v48 = vld [vmem:[%s4847_s6 + $0x10] sm:$0xff] }
  0x87   :  { %3318 = vmatmul.mubr.msk.f32.gmra.mxu1 %vm199_vm0, %v190_v9  ;;  %3324 = vmatprep.subr.mxu1 %v4096_v5  ;;  %v4364_v49 = vld [vmem:[%s4847_s6 + $0x8] sm:$0xff]  ;;  %v4371_v50 = vld [vmem:[%s4847_s6] sm:$0xff]  ;;  %v347_v2 = vld [vmem:[#allocation8 + $0x8] sm:$0xff] }
  0x88   :  { %3325 = vmatpush3.msra.mxu1 %v4263_v10  ;;  %3328 = vmatprep.mubr.msk.f32.mxu1 %vm4097_vm1, %v4096_v5  ;;  %v4397_v59 = vld [vmem:[%s4849_s8] ss:$0 sm:$0xff] }
  0x89   :  { %3326 = vmatprep.subr.mxu1 %v4096_v5  ;;  %3343 = vmatpush3.msra.mxu0 %v4313_v36 }
  0x8a   :  { %3327 = vmatpush3.msra.mxu1 %v4272_v11  ;;  %3344 = vmatprep.subr.mxu0 %v4096_v5 }
  0x8b   :  { %3329 = vmatmul.mubr.msk.f32.vlgmr.msra.gmra.mxu1 %vm348_vm2, %v342_v12  ;;  %3331 = vmatprep.subr.mxu1 %v4096_v5 }
  0x8c   :  { %3332 = vmatpush3.msra.mxu1 %v4246_v3  ;;  %3339 = vmatprep.mubr.msk.f32.mxu1 %vm4097_vm1, %v4096_v5 }
  0x8d   :  { %3333 = vmatprep.subr.mxu1 %v4096_v5  ;;  %3311 = vmatprep.mubr.msk.f32.mxu0 %vm199_vm0, %v185_v38 }
  0x8e   :  { %3334 = vmatpush3.msra.mxu1 %v4254_v8  ;;  %3345 = vmatpush3.msra.mxu0 %v4318_v39 }
  0x8f   :  { %3335 = vmatprep.subr.mxu1 %v4096_v5  ;;  %3312 = vmatmul.mubr.msk.f32.gmra.mxu0 %vm199_vm0, %v186_v40 }
  0x90   :  { %3336 = vmatpush3.msra.mxu1 %v4263_v10  ;;  %3346 = vmatprep.subr.mxu0 %v4096_v5 }
  0x91   :  { %3337 = vmatprep.subr.mxu1 %v4096_v5  ;;  %3347 = vmatpush3.msra.mxu0 %v4324_v41 }
  0x92   :  { %3338 = vmatpush3.msra.mxu1 %v4272_v11  ;;  %3350 = vmatprep.mubr.msk.f32.mxu0 %vm4097_vm1, %v4096_v5 }
  0x93   :  { %3353 = vmatprep.subr.mxu1 %v4096_v5  ;;  %3348 = vmatprep.subr.mxu0 %v4096_v5 }
  0x94   :  { %3349 = vmatpush3.msra.mxu0 %v4330_v42 }
  0x95   :  { %3351 = vmatmul.mubr.msk.f32.vlgmr.msra.gmra.mxu0 %vm348_vm2, %v344_v43  ;;  %3364 = vmatprep.subr.mxu0 %v4096_v5 }
  0x96   :  { %3365 = vmatpush3.msra.mxu0 %v4246_v3  ;;  %3372 = vmatprep.mubr.msk.f32.mxu0 %vm4097_vm1, %v4096_v5 }
  0x97   :  { %3366 = vmatprep.subr.mxu0 %v4096_v5 }
  0x98   :  { %3367 = vmatpush3.msra.mxu0 %v4254_v8 }
  0x99   :  { %3368 = vmatprep.subr.mxu0 %v4096_v5 }
  0x9a   :  { %3369 = vmatpush3.msra.mxu0 %v4263_v10 }
  0x9b   :  { %3370 = vmatprep.subr.mxu0 %v4096_v5 }
  0x9c   :  { %3371 = vmatpush3.msra.mxu0 %v4272_v11 }
  0x9d   :  { %3386 = vmatprep.subr.mxu0 %v4096_v5 }
 0x142   :  { %v4291_v13 = vpop.f32.mrf.mxu1 }
 0x144   :  { %v4293_v14 = vpop.f32.mrf.mxu1 }
 0x145   :  { %v4295_v15 = vpop.f32.mrf.mxu0 }
 0x146   :  { %v296_v55 = vadd.f32 %v4295_v15, %v4302_v18 }
 0x147   :  { %v4297_v16 = vpop.f32.mrf.mxu1  ;;  %v290_v17 = vpop.f32.mrf.mxu0 }
 0x148   :  { %v291_v20 = vadd.f32 %v4302_v18, %v290_v17 }
 0x149   :  { %v4304_v19 = vpop.f32.mrf.mxu1 }
 0x14b   :  { %v418_v21 = vpop.f32.mrf.mxu1 }
 0x14c   :  { %v422_v22 = vadd.f32 %v418_v21, %v291_v20 }
 0x14d   :  { %v3330_v23 = vpop.f32.mrf.mxu1 }
 0x14e   :  { %3666 = vtanh.f32 %v422_v22  ;;  %v3074_v26 = vmul.f32 -1.442695, %v422_v22 }
 0x14f   :  { %v4388_v51 = vpop.f32.mrf.mxu0 }
 0x150   :  { %3668 = vpow2.f32 %v3074_v26 }
 0x151   :  { %v4390_v52 = vpop.f32.mrf.mxu0 }
 0x155   :  { %v620_v53 = vpop.f32.mrf.mxu0 }
 0x157   :  { %v3352_v54 = vpop.f32.mrf.mxu0 }
 0x15b   :  { %v3667_v24 = vpop.eup %3666 }
 0x15c   :  { %436 = vrot.lane.b32.xlu0 %v3667_v24, %s4098_s23 }
 0x15d   :  { %v3669_v27 = vpop.eup %3668 }
 0x15e   :  { %v426_v28 = vadd.f32 1.0, %v3669_v27 }
 0x160   :  { %431 = vrot.lane.b32.xlu0 %v345_v25, %s4099_s24  ;;  %3670 = vrcp.f32 %v426_v28 }
 0x16d   :  { %v3671_v29 = vpop.eup %3670 }
 0x1ce   :  { %v437_v30 = vpop.permute.xlu0 %436 }
 0x1cf   :  { %v439_v31 = vmul.f32 %v3671_v29, %v437_v30 }
 0x1d1   :  { %441 = vrot.lane.b32.xlu1 %v439_v31, %s4099_s24 }
 0x1d2   :  { %v432_v32 = vpop.permute.xlu0 %431 }
 0x1d3   :  { %v434_v33 = vmul.f32 %v3671_v29, %v432_v32 }
 0x243   :  { %v442_v34 = vpop.permute.xlu1 %441 }
 0x244   :  { %v4310_v35 = vadd.f32 %v442_v34, %v434_v33 }
 0x246   :  { %3672 = vtanh.f32 %v4310_v35 }
 0x253   :  { %v3673_v37 = vpop.eup %3672 }
 0x254   :  { %447 = vrot.lane.b32.xlu1 %v3673_v37, %s4098_s23 }
 0x2c6   :  { %v448_v44 = vpop.permute.xlu1 %447 }
 0x2c7   :  { %v450_v45 = vmul.f32 %v3671_v29, %v448_v44  ;;  %v301_v44 = vadd.f32 %v4302_v18, %v4390_v52 }
 0x2c9   :  { %452 = vrot.lane.b32.xlu0 %v450_v45, %s4099_s24 }
 0x33b   :  { %v453_v47 = vpop.permute.xlu0 %452 }
 0x33c   :  { %3340 = vmatmul.mubr.msk.f32.vlgmr.msra.gmra.mxu1 %vm348_vm2, %v453_v47 }
 0x33d   :  { %3354 = vmatpush3.msra.mxu1 %v4349_v46  ;;  %3361 = vmatprep.mubr.msk.f32.mxu1 %vm4097_vm1, %v4096_v5 }
 0x33e   :  { %3355 = vmatprep.subr.mxu1 %v4096_v5 }
 0x33f   :  { %3356 = vmatpush3.msra.mxu1 %v4355_v48 }
 0x340   :  { %3357 = vmatprep.subr.mxu1 %v4096_v5 }
 0x341   :  { %3358 = vmatpush3.msra.mxu1 %v4364_v49 }
 0x342   :  { %3359 = vmatprep.subr.mxu1 %v4096_v5 }
 0x343   :  { %3360 = vmatpush3.msra.mxu1 %v4371_v50 }
 0x344   :  { %3362 = vmatmul.mubr.msk.f32.vlgmr.msra.gmra.mxu1 %vm348_vm2, %v453_v47  ;;  %3375 = vmatprep.subr.mxu1 %v4096_v5 }
 0x345   :  { %3376 = vmatpush3.msra.mxu1 %v4313_v36  ;;  %3383 = vmatprep.mubr.msk.f32.mxu1 %vm4097_vm1, %v4096_v5 }
 0x346   :  { %3377 = vmatprep.subr.mxu1 %v4096_v5 }
 0x347   :  { %3378 = vmatpush3.msra.mxu1 %v4318_v39 }
 0x348   :  { %3379 = vmatprep.subr.mxu1 %v4096_v5 }
 0x349   :  { %3380 = vmatpush3.msra.mxu1 %v4324_v41 }
 0x34a   :  { %3381 = vmatprep.subr.mxu1 %v4096_v5 }
 0x34b   :  { %3382 = vmatpush3.msra.mxu1 %v4330_v42 }
 0x34c   :  { %3397 = vmatprep.subr.mxu1 %v4096_v5 }
 0x3fc   :  { %v522_v56 = vpop.f32.mrf.mxu1 }
 0x3fd   :  { %v526_v57 = vadd.f32 %v522_v56, %v296_v55 }
 0x3fe   :  { %v3341_v58 = vpop.f32.mrf.mxu1 }
 0x3ff   :  { %3674 = vtanh.f32 %v526_v57  ;;  %v3076_v4 = vmul.f32 -1.442695, %v526_v57 }
 0x404   :  { %v690_v60 = vpop.f32.mrf.mxu1 }
 0x405   :  { %v691_v61 = vadd.f32 %v690_v60, %v620_v53 }
 0x406   :  { %v3363_v62 = vpop.f32.mrf.mxu1 }
 0x407   :  { %v700_v63 = vadd.f32 %v4397_v59, %v691_v61 }
 0x409   :  { %3676 = vtanh.f32 %v700_v63  ;;  %v3080_v6 = vmul.f32 -1.442695, %v700_v63 }
 0x40a   :  { %3678 = vpow2.f32 %v3076_v4 }
 0x40b   :  { %3680 = vpow2.f32 %v3080_v6 }
 0x40c   :  { %v3675_v0 = vpop.eup %3674 }
 0x40d   :  { %536 = vrot.lane.b32.xlu1 %v3675_v0, %s4098_s23 }
 0x416   :  { %v3677_v1 = vpop.eup %3676 }
 0x417   :  { %714 = vrot.lane.b32.xlu0 %v3677_v1, %s4098_s23  ;;  %v3679_v7 = vpop.eup %3678 }
 0x418   :  { %v530_v9 = vadd.f32 1.0, %v3679_v7  ;;  %v3681_v12 = vpop.eup %3680 }
 0x419   :  { %v704_v15 = vadd.f32 1.0, %v3681_v12 }
 0x41a   :  { %3682 = vrcp.f32 %v530_v9 }
 0x41b   :  { %709 = vrot.lane.b32.xlu0 %v347_v2, %s4099_s24  ;;  %3684 = vrcp.f32 %v704_v15 }
 0x427   :  { %v3683_v17 = vpop.eup %3682 }
 0x428   :  { %v3685_v22 = vpop.eup %3684  ;;  %v534_v25 = vmul.f32 %v3683_v17, %v4310_v35 }
 0x47f   :  { %v537_v20 = vpop.permute.xlu1 %536 }
 0x480   :  { %v539_v21 = vmul.f32 %v3683_v17, %v537_v20 }
 0x482   :  { %541 = vrot.lane.b32.xlu1 %v539_v21, %s4099_s24 }
 0x489   :  { %v715_v23 = vpop.permute.xlu0 %714 }
 0x48a   :  { %v717_v24 = vmul.f32 %v3685_v22, %v715_v23 }
 0x48c   :  { %719 = vrot.lane.b32.xlu1 %v717_v24, %s4099_s24 }
 0x48d   :  { %v710_v28 = vpop.permute.xlu0 %709 }
 0x48e   :  { %v712_v29 = vmul.f32 %v3685_v22, %v710_v28 }
 0x4f4   :  { %v542_v26 = vpop.permute.xlu1 %541 }
 0x4f5   :  { %v4406_v27 = vadd.f32 %v542_v26, %v534_v25 }
 0x4f7   :  { %3686 = vtanh.f32 %v4406_v27 }
 0x4fe   :  { %v720_v30 = vpop.permute.xlu1 %719 }
 0x4ff   :  { %v4409_v31 = vadd.f32 %v720_v30, %v712_v29 }
 0x501   :  { %3688 = vtanh.f32 %v4409_v31 }
 0x504   :  { %v3687_v32 = vpop.eup %3686 }
 0x505   :  { %547 = vrot.lane.b32.xlu0 %v3687_v32, %s4098_s23 }
 0x50e   :  { %v3689_v33 = vpop.eup %3688 }
 0x50f   :  { %725 = vrot.lane.b32.xlu1 %v3689_v33, %s4098_s23 }
 0x577   :  { %v548_v34 = vpop.permute.xlu0 %547 }
 0x578   :  { %v550_v35 = vmul.f32 %v3683_v17, %v548_v34  ;;  %v306_v34 = vadd.f32 %v4388_v51, %v4302_v18 }
 0x57a   :  { %735 = vrot.lane.b32.xlu0 %v550_v35, %s4099_s24 }
 0x581   :  { %v726_v37 = vpop.permute.xlu1 %725 }
 0x582   :  { %v728_v38 = vmul.f32 %v3685_v22, %v726_v37 }
 0x584   :  { %730 = vrot.lane.b32.xlu1 %v728_v38, %s4099_s24 }
 0x5ec   :  { %v736_v40 = vpop.permute.xlu0 %735 }
 0x5ed   :  { %3373 = vmatmul.mubr.msk.f32.vlgmr.msra.gmra.mxu0 %vm348_vm2, %v736_v40 }
 0x5ee   :  { %3387 = vmatpush3.msra.mxu0 %v4349_v46  ;;  %3394 = vmatprep.mubr.msk.f32.mxu0 %vm4097_vm1, %v4096_v5 }
 0x5ef   :  { %3388 = vmatprep.subr.mxu0 %v4096_v5 }
 0x5f0   :  { %3389 = vmatpush3.msra.mxu0 %v4355_v48 }
 0x5f1   :  { %3390 = vmatprep.subr.mxu0 %v4096_v5 }
 0x5f2   :  { %3391 = vmatpush3.msra.mxu0 %v4364_v49 }
 0x5f3   :  { %3392 = vmatprep.subr.mxu0 %v4096_v5 }
 0x5f4   :  { %3393 = vmatpush3.msra.mxu0 %v4371_v50 }
 0x5f5   :  { %3395 = vmatmul.mubr.msk.f32.vlgmr.msra.gmra.mxu0 %vm348_vm2, %v736_v40  ;;  %3408 = vmatprep.subr.mxu0 %v4096_v5 }
 0x5f6   :  { %v731_v43 = vpop.permute.xlu1 %730  ;;  %3409 = vmatpush3.msra.mxu0 %v4313_v36  ;;  %3416 = vmatprep.mubr.msk.f32.mxu0 %vm4097_vm1, %v4096_v5 }
 0x5f7   :  { %733 = vst.msk [vmem:[#allocation2] sm:$0xff] %vm348_vm2, %v731_v43  ;;  %3384 = vmatmul.mubr.msk.f32.vlgmr.msra.gmra.mxu1 %vm348_vm2, %v731_v43  ;;  %3410 = vmatprep.subr.mxu0 %v4096_v5 }
 0x5f8   :  { %3398 = vmatpush3.msra.mxu1 %v4246_v3  ;;  %3405 = vmatprep.mubr.msk.f32.mxu1 %vm4097_vm1, %v4096_v5 }
 0x5f9   :  { %3399 = vmatprep.subr.mxu1 %v4096_v5  ;;  %3411 = vmatpush3.msra.mxu0 %v4318_v39 }
 0x5fa   :  { %3400 = vmatpush3.msra.mxu1 %v4254_v8  ;;  %3412 = vmatprep.subr.mxu0 %v4096_v5 }
 0x5fb   :  { %3401 = vmatprep.subr.mxu1 %v4096_v5  ;;  %3413 = vmatpush3.msra.mxu0 %v4324_v41 }
 0x5fc   :  { %3402 = vmatpush3.msra.mxu1 %v4263_v10  ;;  %3414 = vmatprep.subr.mxu0 %v4096_v5 }
 0x5fd   :  { %3403 = vmatprep.subr.mxu1 %v4096_v5  ;;  %3415 = vmatpush3.msra.mxu0 %v4330_v42 }
 0x5fe   :  { %3404 = vmatpush3.msra.mxu1 %v4272_v11  ;;  %3430 = vmatprep.subr.mxu0 %v4096_v5 }
 0x5ff   :  { %3419 = vmatprep.subr.mxu1 %v4096_v5 }
 0x6ad   :  { %v805_v45 = vpop.f32.mrf.mxu0 }
 0x6ae   :  { %v809_v47 = vadd.f32 %v805_v45, %v301_v44 }
 0x6af   :  { %v3374_v53 = vpop.f32.mrf.mxu0 }
 0x6b0   :  { %3690 = vtanh.f32 %v809_v47  ;;  %v3082_v63 = vmul.f32 -1.442695, %v809_v47 }
 0x6b5   :  { %v972_v54 = vpop.f32.mrf.mxu0 }
 0x6b7   :  { %v902_v55 = vpop.f32.mrf.mxu1  ;;  %v3396_v56 = vpop.f32.mrf.mxu0 }
 0x6b8   :  { %v973_v57 = vadd.f32 %v972_v54, %v902_v55 }
 0x6b9   :  { %v3385_v58 = vpop.f32.mrf.mxu1 }
 0x6ba   :  { %v976_v60 = vadd.f32 %v4397_v59, %v973_v57 }
 0x6bc   :  { %3692 = vtanh.f32 %v976_v60  ;;  %v3085_v52 = vmul.f32 -1.442695, %v976_v60 }
 0x6bd   :  { %v3691_v61 = vpop.eup %3690  ;;  %3694 = vpow2.f32 %v3082_v63 }
 0x6be   :  { %819 = vrot.lane.b32.xlu0 %v3691_v61, %s4098_s23  ;;  %3696 = vpow2.f32 %v3085_v52 }
 0x6c9   :  { %v3693_v62 = vpop.eup %3692 }
 0x6ca   :  { %986 = vrot.lane.b32.xlu1 %v3693_v62, %s4098_s23  ;;  %v3695_v0 = vpop.eup %3694 }
 0x6cb   :  { %v813_v1 = vadd.f32 1.0, %v3695_v0  ;;  %v3697_v2 = vpop.eup %3696 }
 0x6cc   :  { %v980_v4 = vadd.f32 1.0, %v3697_v2 }
 0x6cd   :  { %3698 = vrcp.f32 %v813_v1 }
 0x6ce   :  { %3700 = vrcp.f32 %v980_v4 }
 0x6da   :  { %v3699_v6 = vpop.eup %3698 }
 0x6db   :  { %v3701_v12 = vpop.eup %3700  ;;  %v817_v20 = vmul.f32 %v3699_v6, %v4406_v27 }
 0x6dc   :  { %v984_v23 = vmul.f32 %v3701_v12, %v4409_v31 }
 0x730   :  { %v820_v7 = vpop.permute.xlu0 %819 }
 0x731   :  { %v822_v9 = vmul.f32 %v3699_v6, %v820_v7 }
 0x733   :  { %824 = vrot.lane.b32.xlu0 %v822_v9, %s4099_s24 }
 0x73c   :  { %v987_v15 = vpop.permute.xlu1 %986 }
 0x73d   :  { %v989_v17 = vmul.f32 %v3701_v12, %v987_v15 }
 0x73f   :  { %991 = vrot.lane.b32.xlu1 %v989_v17, %s4099_s24 }
 0x7a5   :  { %v825_v21 = vpop.permute.xlu0 %824 }
 0x7a6   :  { %v4458_v22 = vadd.f32 %v825_v21, %v817_v20 }
 0x7a8   :  { %3702 = vtanh.f32 %v4458_v22 }
 0x7b1   :  { %v992_v24 = vpop.permute.xlu1 %991 }
 0x7b2   :  { %v4462_v25 = vadd.f32 %v992_v24, %v984_v23 }
 0x7b4   :  { %3704 = vtanh.f32 %v4462_v25 }
 0x7b5   :  { %v3703_v26 = vpop.eup %3702 }
 0x7b6   :  { %830 = vrot.lane.b32.xlu0 %v3703_v26, %s4098_s23 }
 0x7c1   :  { %v3705_v28 = vpop.eup %3704 }
 0x7c2   :  { %997 = vrot.lane.b32.xlu1 %v3705_v28, %s4098_s23  ;;  %v311_v28 = vadd.f32 %v4302_v18, %v4293_v14 }
 0x828   :  { %v831_v29 = vpop.permute.xlu0 %830 }
 0x829   :  { %v833_v27 = vmul.f32 %v3699_v6, %v831_v29 }
 0x82b   :  { %1007 = vrot.lane.b32.xlu0 %v833_v27, %s4099_s24 }
 0x834   :  { %v998_v30 = vpop.permute.xlu1 %997 }
 0x835   :  { %v1000_v32 = vmul.f32 %v3701_v12, %v998_v30 }
 0x837   :  { %1002 = vrot.lane.b32.xlu1 %v1000_v32, %s4099_s24 }
 0x89d   :  { %v1008_v31 = vpop.permute.xlu0 %1007 }
 0x89e   :  { %3406 = vmatmul.mubr.msk.f32.vlgmr.msra.gmra.mxu1 %vm348_vm2, %v1008_v31 }
 0x89f   :  { %3420 = vmatpush3.msra.mxu1 %v4349_v46  ;;  %3427 = vmatprep.mubr.msk.f32.mxu1 %vm4097_vm1, %v4096_v5 }
 0x8a0   :  { %3421 = vmatprep.subr.mxu1 %v4096_v5 }
 0x8a1   :  { %3422 = vmatpush3.msra.mxu1 %v4355_v48 }
 0x8a2   :  { %3423 = vmatprep.subr.mxu1 %v4096_v5 }
 0x8a3   :  { %3424 = vmatpush3.msra.mxu1 %v4364_v49 }
 0x8a4   :  { %3425 = vmatprep.subr.mxu1 %v4096_v5 }
 0x8a5   :  { %3426 = vmatpush3.msra.mxu1 %v4371_v50 }
 0x8a6   :  { %3428 = vmatmul.mubr.msk.f32.vlgmr.msra.gmra.mxu1 %vm348_vm2, %v1008_v31  ;;  %3441 = vmatprep.subr.mxu1 %v4096_v5 }
 0x8a7   :  { %3442 = vmatpush3.msra.mxu1 %v4313_v36  ;;  %3449 = vmatprep.mubr.msk.f32.mxu1 %vm4097_vm1, %v4096_v5 }
 0x8a8   :  { %3443 = vmatprep.subr.mxu1 %v4096_v5 }
 0x8a9   :  { %v1003_v33 = vpop.permute.xlu1 %1002  ;;  %3444 = vmatpush3.msra.mxu1 %v4318_v39 }
 0x8aa   :  { %1005 = vst.msk [vmem:[#allocation2 + $0x8] sm:$0xff] %vm348_vm2, %v1003_v33  ;;  %3417 = vmatmul.mubr.msk.f32.vlgmr.msra.gmra.mxu0 %vm348_vm2, %v1003_v33  ;;  %3445 = vmatprep.subr.mxu1 %v4096_v5 }
 0x8ab   :  { %3431 = vmatpush3.msra.mxu0 %v4246_v3  ;;  %3438 = vmatprep.mubr.msk.f32.mxu0 %vm4097_vm1, %v4096_v5 }
 0x8ac   :  { %3432 = vmatprep.subr.mxu0 %v4096_v5  ;;  %3446 = vmatpush3.msra.mxu1 %v4324_v41 }
 0x8ad   :  { %3433 = vmatpush3.msra.mxu0 %v4254_v8  ;;  %3447 = vmatprep.subr.mxu1 %v4096_v5 }
 0x8ae   :  { %3434 = vmatprep.subr.mxu0 %v4096_v5  ;;  %3448 = vmatpush3.msra.mxu1 %v4330_v42 }
 0x8af   :  { %3435 = vmatpush3.msra.mxu0 %v4263_v10  ;;  %3463 = vmatprep.subr.mxu1 %v4096_v5 }
 0x8b0   :  { %3436 = vmatprep.subr.mxu0 %v4096_v5 }
 0x8b1   :  { %3437 = vmatpush3.msra.mxu0 %v4272_v11 }
 0x8b2   :  { %3452 = vmatprep.subr.mxu0 %v4096_v5 }
 0x95e   :  { %v1077_v35 = vpop.f32.mrf.mxu1 }
 0x95f   :  { %v1081_v37 = vadd.f32 %v1077_v35, %v306_v34 }
 0x960   :  { %v3407_v38 = vpop.f32.mrf.mxu1 }
 0x961   :  { %3706 = vtanh.f32 %v1081_v37  ;;  %v3087_v56 = vmul.f32 -1.442695, %v1081_v37 }
 0x966   :  { %v1244_v40 = vpop.f32.mrf.mxu1 }
 0x968   :  { %v3429_v43 = vpop.f32.mrf.mxu1 }
 0x96a   :  { %v1174_v44 = vpop.f32.mrf.mxu0 }
 0x96b   :  { %v1245_v45 = vadd.f32 %v1244_v40, %v1174_v44 }
 0x96c   :  { %v3418_v47 = vpop.f32.mrf.mxu0 }
 0x96d   :  { %v1248_v53 = vadd.f32 %v4397_v59, %v1245_v45 }
 0x96e   :  { %v3707_v54 = vpop.eup %3706 }
 0x96f   :  { %3708 = vtanh.f32 %v1248_v53  ;;  %1091 = vrot.lane.b32.xlu0 %v3707_v54, %s4098_s23  ;;  %v3090_v51 = vmul.f32 -1.442695, %v1248_v53 }
 0x970   :  { %3710 = vpow2.f32 %v3087_v56 }
 0x971   :  { %3712 = vpow2.f32 %v3090_v51 }
 0x97c   :  { %v3709_v55 = vpop.eup %3708 }
 0x97d   :  { %1258 = vrot.lane.b32.xlu1 %v3709_v55, %s4098_s23  ;;  %v3711_v57 = vpop.eup %3710 }
 0x97e   :  { %v1085_v58 = vadd.f32 1.0, %v3711_v57  ;;  %v3713_v60 = vpop.eup %3712 }
 0x97f   :  { %v1252_v61 = vadd.f32 1.0, %v3713_v60 }
 0x980   :  { %3714 = vrcp.f32 %v1085_v58 }
 0x981   :  { %3716 = vrcp.f32 %v1252_v61 }
 0x98d   :  { %v3715_v62 = vpop.eup %3714 }
 0x98e   :  { %v3717_v0 = vpop.eup %3716  ;;  %v1089_v4 = vmul.f32 %v3715_v62, %v4458_v22 }
 0x98f   :  { %v1256_v9 = vmul.f32 %v3717_v0, %v4462_v25 }
 0x9e1   :  { %v1092_v63 = vpop.permute.xlu0 %1091 }
 0x9e2   :  { %v1094_v52 = vmul.f32 %v3715_v62, %v1092_v63 }
 0x9e4   :  { %1096 = vrot.lane.b32.xlu0 %v1094_v52, %s4099_s24 }
 0x9ef   :  { %v1259_v1 = vpop.permute.xlu1 %1258 }
 0x9f0   :  { %v1261_v2 = vmul.f32 %v3717_v0, %v1259_v1 }
 0x9f2   :  { %1263 = vrot.lane.b32.xlu1 %v1261_v2, %s4099_s24 }
 0xa56   :  { %v1097_v6 = vpop.permute.xlu0 %1096 }
 0xa57   :  { %v4511_v7 = vadd.f32 %v1097_v6, %v1089_v4 }
 0xa59   :  { %3718 = vtanh.f32 %v4511_v7 }
 0xa64   :  { %v1264_v12 = vpop.permute.xlu1 %1263 }
 0xa65   :  { %v4515_v15 = vadd.f32 %v1264_v12, %v1256_v9 }
 0xa66   :  { %v3719_v17 = vpop.eup %3718 }
 0xa67   :  { %3720 = vtanh.f32 %v4515_v15  ;;  %1102 = vrot.lane.b32.xlu0 %v3719_v17, %s4098_s23 }
 0xa74   :  { %v3721_v20 = vpop.eup %3720 }
 0xa75   :  { %1269 = vrot.lane.b32.xlu1 %v3721_v20, %s4098_s23 }
 0xad9   :  { %v1103_v21 = vpop.permute.xlu0 %1102 }
 0xada   :  { %v1105_v22 = vmul.f32 %v3715_v62, %v1103_v21 }
 0xadc   :  { %1279 = vrot.lane.b32.xlu0 %v1105_v22, %s4099_s24 }
 0xae7   :  { %v1270_v23 = vpop.permute.xlu1 %1269 }
 0xae8   :  { %v1272_v24 = vmul.f32 %v3717_v0, %v1270_v23 }
 0xaea   :  { %1274 = vrot.lane.b32.xlu1 %v1272_v24, %s4099_s24 }
 0xb4e   :  { %v1280_v25 = vpop.permute.xlu0 %1279 }
 0xb4f   :  { %3439 = vmatmul.mubr.msk.f32.vlgmr.msra.gmra.mxu0 %vm348_vm2, %v1280_v25 }
 0xb50   :  { %3453 = vmatpush3.msra.mxu0 %v4349_v46  ;;  %3460 = vmatprep.mubr.msk.f32.mxu0 %vm4097_vm1, %v4096_v5 }
 0xb51   :  { %3454 = vmatprep.subr.mxu0 %v4096_v5 }
 0xb52   :  { %3455 = vmatpush3.msra.mxu0 %v4355_v48 }
 0xb53   :  { %3456 = vmatprep.subr.mxu0 %v4096_v5 }
 0xb54   :  { %3457 = vmatpush3.msra.mxu0 %v4364_v49 }
 0xb55   :  { %3458 = vmatprep.subr.mxu0 %v4096_v5 }
 0xb56   :  { %3459 = vmatpush3.msra.mxu0 %v4371_v50 }
 0xb57   :  { %3461 = vmatmul.mubr.msk.f32.vlgmr.msra.gmra.mxu0 %vm348_vm2, %v1280_v25  ;;  %3474 = vmatprep.subr.mxu0 %v4096_v5 }
 0xb58   :  { %3475 = vmatpush3.msra.mxu0 %v4313_v36  ;;  %3482 = vmatprep.mubr.msk.f32.mxu0 %vm4097_vm1, %v4096_v5 }
 0xb59   :  { %3476 = vmatprep.subr.mxu0 %v4096_v5 }
 0xb5a   :  { %3477 = vmatpush3.msra.mxu0 %v4318_v39 }
 0xb5b   :  { %3478 = vmatprep.subr.mxu0 %v4096_v5 }
 0xb5c   :  { %v1275_v26 = vpop.permute.xlu1 %1274  ;;  %3479 = vmatpush3.msra.mxu0 %v4324_v41 }
 0xb5d   :  { %1277 = vst.msk [vmem:[#allocation2 + $0x10] sm:$0xff] %vm348_vm2, %v1275_v26  ;;  %3450 = vmatmul.mubr.msk.f32.vlgmr.msra.gmra.mxu1 %vm348_vm2, %v1275_v26  ;;  %3480 = vmatprep.subr.mxu0 %v4096_v5 }
 0xb5e   :  { %3464 = vmatpush3.msra.mxu1 %v4246_v3  ;;  %3471 = vmatprep.mubr.msk.f32.mxu1 %vm4097_vm1, %v4096_v5 }
 0xb5f   :  { %3465 = vmatprep.subr.mxu1 %v4096_v5  ;;  %3481 = vmatpush3.msra.mxu0 %v4330_v42 }
 0xb60   :  { %3466 = vmatpush3.msra.mxu1 %v4254_v8  ;;  %3496 = vmatprep.subr.mxu0 %v4096_v5 }
 0xb61   :  { %3467 = vmatprep.subr.mxu1 %v4096_v5 }
 0xb62   :  { %3468 = vmatpush3.msra.mxu1 %v4263_v10 }
 0xb63   :  { %3469 = vmatprep.subr.mxu1 %v4096_v5 }
 0xb64   :  { %3470 = vmatpush3.msra.mxu1 %v4272_v11 }
 0xb65   :  { %3485 = vmatprep.subr.mxu1 %v4096_v5 }
 0xc0f   :  { %v1349_v29 = vpop.f32.mrf.mxu0 }
 0xc10   :  { %v1353_v27 = vadd.f32 %v1349_v29, %v311_v28 }
 0xc11   :  { %v3440_v30 = vpop.f32.mrf.mxu0 }
 0xc12   :  { %3722 = vtanh.f32 %v1353_v27  ;;  %v3092_v43 = vmul.f32 -1.442695, %v1353_v27 }
 0xc17   :  { %v1516_v32 = vpop.f32.mrf.mxu0 }
 0xc19   :  { %v3462_v31 = vpop.f32.mrf.mxu0 }
 0xc1d   :  { %v1446_v33 = vpop.f32.mrf.mxu1 }
 0xc1e   :  { %v1517_v34 = vadd.f32 %v1516_v32, %v1446_v33 }
 0xc1f   :  { %v3723_v35 = vpop.eup %3722  ;;  %v3451_v37 = vpop.f32.mrf.mxu1 }
 0xc20   :  { %v1520_v38 = vadd.f32 %v4397_v59, %v1517_v34  ;;  %1363 = vrot.lane.b32.xlu0 %v3723_v35, %s4098_s23 }
 0xc22   :  { %3724 = vtanh.f32 %v1520_v38  ;;  %v3095_v14 = vmul.f32 -1.442695, %v1520_v38 }
 0xc23   :  { %3726 = vpow2.f32 %v3092_v43 }
 0xc24   :  { %3728 = vpow2.f32 %v3095_v14 }
 0xc2f   :  { %v3725_v40 = vpop.eup %3724 }
 0xc30   :  { %1530 = vrot.lane.b32.xlu1 %v3725_v40, %s4098_s23  ;;  %v3727_v44 = vpop.eup %3726 }
 0xc31   :  { %v1357_v45 = vadd.f32 1.0, %v3727_v44  ;;  %v3729_v47 = vpop.eup %3728 }
 0xc32   :  { %v1524_v53 = vadd.f32 1.0, %v3729_v47 }
 0xc33   :  { %3730 = vrcp.f32 %v1357_v45 }
 0xc34   :  { %3732 = vrcp.f32 %v1524_v53 }
 0xc40   :  { %v3731_v54 = vpop.eup %3730 }
 0xc41   :  { %v3733_v51 = vpop.eup %3732  ;;  %v1361_v60 = vmul.f32 %v3731_v54, %v4511_v7 }
 0xc42   :  { %v1528_v63 = vmul.f32 %v3733_v51, %v4515_v15 }
 0xc92   :  { %v1364_v55 = vpop.permute.xlu0 %1363 }
 0xc93   :  { %v1366_v56 = vmul.f32 %v3731_v54, %v1364_v55 }
 0xc95   :  { %1368 = vrot.lane.b32.xlu0 %v1366_v56, %s4099_s24 }
 0xca2   :  { %v1531_v57 = vpop.permute.xlu1 %1530 }
 0xca3   :  { %v1533_v58 = vmul.f32 %v3733_v51, %v1531_v57 }
 0xca5   :  { %1535 = vrot.lane.b32.xlu1 %v1533_v58, %s4099_s24 }
 0xd07   :  { %v1369_v61 = vpop.permute.xlu0 %1368 }
 0xd08   :  { %v4564_v62 = vadd.f32 %v1369_v61, %v1361_v60  ;;  %v4673_v60 = vld [vmem:[%s4846_s5] ss:$0 sm:$0xff] }
 0xd09   :  { %v321_v61 = vadd.f32 %v4673_v60, %v4304_v19 }
 0xd0a   :  { %3734 = vtanh.f32 %v4564_v62 }
 0xd17   :  { %v3735_v52 = vpop.eup %3734  ;;  %v1536_v0 = vpop.permute.xlu1 %1535 }
 0xd18   :  { %v4568_v1 = vadd.f32 %v1536_v0, %v1528_v63  ;;  %1374 = vrot.lane.b32.xlu0 %v3735_v52, %s4098_s23 }
 0xd1a   :  { %3736 = vtanh.f32 %v4568_v1 }
 0xd27   :  { %v3737_v2 = vpop.eup %3736 }
 0xd28   :  { %1541 = vrot.lane.b32.xlu1 %v3737_v2, %s4098_s23 }
 0xd8a   :  { %v1375_v4 = vpop.permute.xlu0 %1374 }
 0xd8b   :  { %v1377_v6 = vmul.f32 %v3731_v54, %v1375_v4 }
 0xd8d   :  { %1551 = vrot.lane.b32.xlu0 %v1377_v6, %s4099_s24 }
 0xd9a   :  { %v1542_v7 = vpop.permute.xlu1 %1541 }
 0xd9b   :  { %v1544_v9 = vmul.f32 %v3733_v51, %v1542_v7 }
 0xd9d   :  { %1546 = vrot.lane.b32.xlu1 %v1544_v9, %s4099_s24 }
 0xdff   :  { %v1552_v12 = vpop.permute.xlu0 %1551 }
 0xe00   :  { %3472 = vmatmul.mubr.msk.f32.vlgmr.msra.gmra.mxu1 %vm348_vm2, %v1552_v12 }
 0xe01   :  { %3486 = vmatpush3.msra.mxu1 %v4349_v46  ;;  %3493 = vmatprep.mubr.msk.f32.mxu1 %vm4097_vm1, %v4096_v5 }
 0xe02   :  { %3487 = vmatprep.subr.mxu1 %v4096_v5 }
 0xe03   :  { %3488 = vmatpush3.msra.mxu1 %v4355_v48 }
 0xe04   :  { %3489 = vmatprep.subr.mxu1 %v4096_v5 }
 0xe05   :  { %3490 = vmatpush3.msra.mxu1 %v4364_v49 }
 0xe06   :  { %3491 = vmatprep.subr.mxu1 %v4096_v5 }
 0xe07   :  { %3492 = vmatpush3.msra.mxu1 %v4371_v50 }
 0xe08   :  { %3494 = vmatmul.mubr.msk.f32.vlgmr.msra.gmra.mxu1 %vm348_vm2, %v1552_v12  ;;  %3507 = vmatprep.subr.mxu1 %v4096_v5 }
 0xe09   :  { %3508 = vmatpush3.msra.mxu1 %v4313_v36  ;;  %3515 = vmatprep.mubr.msk.f32.mxu1 %vm4097_vm1, %v4096_v5 }
 0xe0a   :  { %3509 = vmatprep.subr.mxu1 %v4096_v5 }
 0xe0b   :  { %3510 = vmatpush3.msra.mxu1 %v4318_v39 }
 0xe0c   :  { %3511 = vmatprep.subr.mxu1 %v4096_v5 }
 0xe0d   :  { %3512 = vmatpush3.msra.mxu1 %v4324_v41 }
 0xe0e   :  { %3513 = vmatprep.subr.mxu1 %v4096_v5 }
 0xe0f   :  { %v1547_v15 = vpop.permute.xlu1 %1546  ;;  %3514 = vmatpush3.msra.mxu1 %v4330_v42 }
 0xe10   :  { %1549 = vst.msk [vmem:[#allocation2 + $0x18] sm:$0xff] %vm348_vm2, %v1547_v15  ;;  %3483 = vmatmul.mubr.msk.f32.vlgmr.msra.gmra.mxu0 %vm348_vm2, %v1547_v15  ;;  %3529 = vmatprep.subr.mxu1 %v4096_v5 }
 0xe11   :  { %3497 = vmatpush3.msra.mxu0 %v4246_v3  ;;  %3504 = vmatprep.mubr.msk.f32.mxu0 %vm4097_vm1, %v4096_v5  ;;  %v316_v3 = vadd.f32 %v4291_v13, %v4302_v18 }
 0xe12   :  { %3498 = vmatprep.subr.mxu0 %v4096_v5 }
 0xe13   :  { %3499 = vmatpush3.msra.mxu0 %v4254_v8 }
 0xe14   :  { %3500 = vmatprep.subr.mxu0 %v4096_v5 }
 0xe15   :  { %3501 = vmatpush3.msra.mxu0 %v4263_v10 }
 0xe16   :  { %3502 = vmatprep.subr.mxu0 %v4096_v5 }
 0xe17   :  { %3503 = vmatpush3.msra.mxu0 %v4272_v11 }
 0xe18   :  { %3518 = vmatprep.subr.mxu0 %v4096_v5 }
 0xec0   :  { %v1621_v17 = vpop.f32.mrf.mxu1 }
 0xec1   :  { %v1625_v20 = vadd.f32 %v1621_v17, %v316_v3 }
 0xec2   :  { %v3473_v21 = vpop.f32.mrf.mxu1 }
 0xec3   :  { %3738 = vtanh.f32 %v1625_v20  ;;  %v3097_v28 = vmul.f32 -1.442695, %v1625_v20 }
 0xec8   :  { %v1788_v22 = vpop.f32.mrf.mxu1 }
 0xeca   :  { %v3495_v23 = vpop.f32.mrf.mxu1 }
 0xed0   :  { %v3739_v8 = vpop.eup %3738  ;;  %v1718_v24 = vpop.f32.mrf.mxu0 }
 0xed1   :  { %v1789_v25 = vadd.f32 %v1788_v22, %v1718_v24  ;;  %1635 = vrot.lane.b32.xlu0 %v3739_v8, %s4098_s23 }
 0xed2   :  { %v3484_v10 = vpop.f32.mrf.mxu0 }
 0xed3   :  { %v1792_v26 = vadd.f32 %v4397_v59, %v1789_v25 }
 0xed5   :  { %3740 = vtanh.f32 %v1792_v26  ;;  %v3100_v18 = vmul.f32 -1.442695, %v1792_v26 }
 0xed6   :  { %3742 = vpow2.f32 %v3097_v28 }
 0xed7   :  { %3744 = vpow2.f32 %v3100_v18 }
 0xee2   :  { %v3741_v11 = vpop.eup %3740 }
 0xee3   :  { %1802 = vrot.lane.b32.xlu1 %v3741_v11, %s4098_s23  ;;  %v3743_v13 = vpop.eup %3742 }
 0xee4   :  { %v1629_v29 = vadd.f32 1.0, %v3743_v13  ;;  %v3745_v27 = vpop.eup %3744 }
 0xee5   :  { %v1796_v33 = vadd.f32 1.0, %v3745_v27 }
 0xee6   :  { %3746 = vrcp.f32 %v1629_v29 }
 0xee7   :  { %3748 = vrcp.f32 %v1796_v33 }
 0xef3   :  { %v3747_v30 = vpop.eup %3746 }
 0xef4   :  { %v3749_v34 = vpop.eup %3748  ;;  %v1633_v38 = vmul.f32 %v3747_v30, %v4564_v62 }
 0xef5   :  { %v1800_v44 = vmul.f32 %v3749_v34, %v4568_v1 }
 0xf43   :  { %v1636_v32 = vpop.permute.xlu0 %1635 }
 0xf44   :  { %v1638_v31 = vmul.f32 %v3747_v30, %v1636_v32 }
 0xf46   :  { %1640 = vrot.lane.b32.xlu0 %v1638_v31, %s4099_s24 }
 0xf55   :  { %v1803_v35 = vpop.permute.xlu1 %1802 }
 0xf56   :  { %v1805_v37 = vmul.f32 %v3749_v34, %v1803_v35 }
 0xf58   :  { %1807 = vrot.lane.b32.xlu1 %v1805_v37, %s4099_s24  ;;  %v3803_v37 = vld [vmem:[#allocation11 + $0x18] sm:$0xff] }
 0xfb8   :  { %v1641_v40 = vpop.permute.xlu0 %1640 }
 0xfb9   :  { %v4617_v43 = vadd.f32 %v1641_v40, %v1633_v38  ;;  %v3804_v38 = vld [vmem:[#allocation11 + $0x10] sm:$0xff]  ;;  %v3805_v40 = vld [vmem:[#allocation11 + $0x8] sm:$0xff] }
 0xfbb   :  { %3750 = vtanh.f32 %v4617_v43 }
 0xfc8   :  { %v3751_v14 = vpop.eup %3750 }
 0xfc9   :  { %1646 = vrot.lane.b32.xlu0 %v3751_v14, %s4098_s23  ;;  %v326_v14 = vadd.f32 %v4673_v60, %v4297_v16 }
 0xfca   :  { %v1808_v45 = vpop.permute.xlu1 %1807 }
 0xfcb   :  { %v4622_v47 = vadd.f32 %v1808_v45, %v1800_v44 }
 0xfcd   :  { %3752 = vtanh.f32 %v4622_v47 }
 0xfda   :  { %v3753_v53 = vpop.eup %3752 }
 0xfdb   :  { %1813 = vrot.lane.b32.xlu1 %v3753_v53, %s4098_s23 }
0x103b   :  { %v1647_v54 = vpop.permute.xlu0 %1646 }
0x103c   :  { %v1649_v55 = vmul.f32 %v3747_v30, %v1647_v54 }
0x103e   :  { %1823 = vrot.lane.b32.xlu0 %v1649_v55, %s4099_s24 }
0x104d   :  { %v1814_v56 = vpop.permute.xlu1 %1813 }
0x104e   :  { %v1816_v51 = vmul.f32 %v3749_v34, %v1814_v56 }
0x1050   :  { %1818 = vrot.lane.b32.xlu1 %v1816_v51, %s4099_s24 }
0x10b0   :  { %v1824_v57 = vpop.permute.xlu0 %1823 }
0x10b1   :  { %3505 = vmatmul.mubr.msk.f32.vlgmr.msra.gmra.mxu0 %vm348_vm2, %v1824_v57 }
0x10b2   :  { %3519 = vmatpush3.msra.mxu0 %v4349_v46  ;;  %3526 = vmatprep.mubr.msk.f32.mxu0 %vm4097_vm1, %v4096_v5 }
0x10b3   :  { %3520 = vmatprep.subr.mxu0 %v4096_v5 }
0x10b4   :  { %3521 = vmatpush3.msra.mxu0 %v4355_v48 }
0x10b5   :  { %3522 = vmatprep.subr.mxu0 %v4096_v5 }
0x10b6   :  { %3523 = vmatpush3.msra.mxu0 %v4364_v49 }
0x10b7   :  { %3524 = vmatprep.subr.mxu0 %v4096_v5 }
0x10b8   :  { %3525 = vmatpush3.msra.mxu0 %v4371_v50 }
0x10b9   :  { %3527 = vmatmul.mubr.msk.f32.vlgmr.msra.gmra.mxu0 %vm348_vm2, %v1824_v57  ;;  %3540 = vmatprep.subr.mxu0 %v4096_v5 }
0x10ba   :  { %3541 = vmatpush3.msra.mxu0 %v4313_v36  ;;  %3548 = vmatprep.mubr.msk.f32.mxu0 %vm4097_vm1, %v4096_v5  ;;  %v3794_v36 = vld [vmem:[%s4845_s4 + $0x18] sm:$0xff] }
0x10bb   :  { %3542 = vmatprep.subr.mxu0 %v4096_v5 }
0x10bc   :  { %3543 = vmatpush3.msra.mxu0 %v4318_v39  ;;  %v3795_v39 = vld [vmem:[%s4845_s4 + $0x10] sm:$0xff] }
0x10bd   :  { %3544 = vmatprep.subr.mxu0 %v4096_v5 }
0x10be   :  { %3545 = vmatpush3.msra.mxu0 %v4324_v41  ;;  %v3796_v41 = vld [vmem:[%s4845_s4 + $0x8] sm:$0xff] }
0x10bf   :  { %3546 = vmatprep.subr.mxu0 %v4096_v5 }
0x10c0   :  { %3547 = vmatpush3.msra.mxu0 %v4330_v42  ;;  %v3797_v42 = vld [vmem:[%s4845_s4] sm:$0xff] }
0x10c1   :  { %3562 = vmatprep.subr.mxu0 %v4096_v5 }
0x10c2   :  { %v1819_v58 = vpop.permute.xlu1 %1818 }
0x10c3   :  { %1821 = vst.msk [vmem:[#allocation2 + $0x20] sm:$0xff] %vm348_vm2, %v1819_v58  ;;  %3516 = vmatmul.mubr.msk.f32.vlgmr.msra.gmra.mxu1 %vm348_vm2, %v1819_v58 }
0x10c4   :  { %3530 = vmatpush3.msra.mxu1 %v3794_v36  ;;  %3537 = vmatprep.mubr.msk.f32.mxu1 %vm4097_vm1, %v4096_v5 }
0x10c5   :  { %3531 = vmatprep.subr.mxu1 %v4096_v5 }
0x10c6   :  { %3532 = vmatpush3.msra.mxu1 %v3795_v39 }
0x10c7   :  { %3533 = vmatprep.subr.mxu1 %v4096_v5 }
0x10c8   :  { %3534 = vmatpush3.msra.mxu1 %v3796_v41 }
0x10c9   :  { %3535 = vmatprep.subr.mxu1 %v4096_v5 }
0x10ca   :  { %3536 = vmatpush3.msra.mxu1 %v3797_v42 }
0x10cb   :  { %3551 = vmatprep.subr.mxu1 %v4096_v5 }
0x1171   :  { %v1893_v62 = vpop.f32.mrf.mxu0 }
0x1172   :  { %v1897_v63 = vadd.f32 %v1893_v62, %v321_v61 }
0x1173   :  { %v3506_v52 = vpop.f32.mrf.mxu0 }
0x1174   :  { %3754 = vtanh.f32 %v1897_v63  ;;  %v3102_v15 = vmul.f32 -1.442695, %v1897_v63 }
0x1179   :  { %v2060_v0 = vpop.f32.mrf.mxu0 }
0x117b   :  { %v3528_v1 = vpop.f32.mrf.mxu0 }
0x1181   :  { %v3755_v2 = vpop.eup %3754 }
0x1182   :  { %1907 = vrot.lane.b32.xlu0 %v3755_v2, %s4098_s23 }
0x1183   :  { %v1990_v4 = vpop.f32.mrf.mxu1 }
0x1184   :  { %v2061_v6 = vadd.f32 %v2060_v0, %v1990_v4 }
0x1185   :  { %v3517_v7 = vpop.f32.mrf.mxu1 }
0x1186   :  { %v2064_v9 = vadd.f32 %v4397_v59, %v2061_v6 }
0x1188   :  { %3756 = vtanh.f32 %v2064_v9  ;;  %v3105_v17 = vmul.f32 -1.442695, %v2064_v9 }
0x1189   :  { %3758 = vpow2.f32 %v3102_v15 }
0x1195   :  { %v3757_v12 = vpop.eup %3756 }
0x1196   :  { %2074 = vrot.lane.b32.xlu1 %v3757_v12, %s4098_s23  ;;  %v3759_v19 = vpop.eup %3758 }
0x1197   :  { %v1901_v3 = vadd.f32 1.0, %v3759_v19 }
0x1199   :  { %3760 = vrcp.f32 %v1901_v3 }
0x119a   :  { %3762 = vpow2.f32 %v3105_v17  ;;  %v2569_v17 = vld [vmem:[#allocation12 + $0x18] sm:$0xff] }
0x11a6   :  { %v3761_v20 = vpop.eup %3760 }
0x11a7   :  { %v3763_v22 = vpop.eup %3762  ;;  %v1905_v10 = vmul.f32 %v3761_v20, %v4617_v43  ;;  %v3806_v43 = vld [vmem:[#allocation11] sm:$0xff] }
0x11a8   :  { %v2068_v8 = vadd.f32 1.0, %v3763_v22 }
0x11aa   :  { %3764 = vrcp.f32 %v2068_v8 }
0x11b7   :  { %v3765_v59 = vpop.eup %3764 }
0x11b8   :  { %v2072_v13 = vmul.f32 %v3765_v59, %v4622_v47 }
0x11f4   :  { %v1908_v21 = vpop.permute.xlu0 %1907 }
0x11f5   :  { %v1910_v23 = vmul.f32 %v3761_v20, %v1908_v21 }
0x11f7   :  { %1912 = vrot.lane.b32.xlu0 %v1910_v23, %s4099_s24 }
0x1208   :  { %v2075_v24 = vpop.permute.xlu1 %2074 }
0x1209   :  { %v2077_v25 = vmul.f32 %v3765_v59, %v2075_v24  ;;  %v2568_v24 = vld [vmem:[#allocation12 + $0x10] sm:$0xff] }
0x120b   :  { %2079 = vrot.lane.b32.xlu1 %v2077_v25, %s4099_s24  ;;  %v2558_v25 = vld [vmem:[#allocation2] sm:$0xff] }
0x1269   :  { %v1913_v26 = vpop.permute.xlu0 %1912 }
0x126a   :  { %v4683_v11 = vadd.f32 %v1913_v26, %v1905_v10  ;;  %v2567_v10 = vld [vmem:[#allocation12 + $0x8] sm:$0xff]  ;;  %v2566_v26 = vld [vmem:[#allocation12] sm:$0xff] }
0x126c   :  { %3766 = vtanh.f32 %v4683_v11 }
0x1279   :  { %v3767_v28 = vpop.eup %3766 }
0x127a   :  { %1918 = vrot.lane.b32.xlu0 %v3767_v28, %s4098_s23  ;;  %v2560_v28 = vld [vmem:[#allocation2 + $0x10] sm:$0xff] }
0x127d   :  { %v2080_v18 = vpop.permute.xlu1 %2079 }
0x127e   :  { %v4688_v29 = vadd.f32 %v2080_v18, %v2072_v13  ;;  %v2561_v13 = vld [vmem:[#allocation2 + $0x18] sm:$0xff]  ;;  %v2562_v18 = vld [vmem:[#allocation2 + $0x20] sm:$0xff] }
0x1280   :  { %3768 = vtanh.f32 %v4688_v29 }
0x128d   :  { %v3769_v27 = vpop.eup %3768 }
0x128e   :  { %2085 = vrot.lane.b32.xlu1 %v3769_v27, %s4098_s23 }
0x12ec   :  { %v1919_v30 = vpop.permute.xlu0 %1918 }
0x12ed   :  { %v1921_v32 = vmul.f32 %v3761_v20, %v1919_v30  ;;  %v2717_v30 = vld [vmem:[#allocation15 + $0x18] sm:$0xff] }
0x12ef   :  { %2095 = vrot.lane.b32.xlu0 %v1921_v32, %s4099_s24  ;;  %v2716_v32 = vld [vmem:[#allocation15 + $0x10] sm:$0xff] }
0x1300   :  { %v2086_v31 = vpop.permute.xlu1 %2085 }
0x1301   :  { %v2088_v33 = vmul.f32 %v3765_v59, %v2086_v31  ;;  %v2715_v31 = vld [vmem:[#allocation15 + $0x8] sm:$0xff] }
0x1303   :  { %2090 = vrot.lane.b32.xlu1 %v2088_v33, %s4099_s24  ;;  %v2714_v33 = vld [vmem:[#allocation15] sm:$0xff] }
0x1361   :  { %v2096_v34 = vpop.permute.xlu0 %2095 }
0x1362   :  { %3538 = vmatmul.mubr.msk.f32.vlgmr.msra.gmra.mxu1 %vm348_vm2, %v2096_v34 }
0x1363   :  { %3552 = vmatpush3.msra.mxu1 %v4349_v46  ;;  %3559 = vmatprep.mubr.msk.f32.mxu1 %vm4097_vm1, %v4096_v5  ;;  %v3799_v46 = vld [vmem:[%s4847_s6 + $0x18] sm:$0xff] }
0x1364   :  { %3553 = vmatprep.subr.mxu1 %v4096_v5 }
0x1365   :  { %3554 = vmatpush3.msra.mxu1 %v4355_v48  ;;  %v3800_v48 = vld [vmem:[%s4847_s6 + $0x10] sm:$0xff] }
0x1366   :  { %3555 = vmatprep.subr.mxu1 %v4096_v5 }
0x1367   :  { %3556 = vmatpush3.msra.mxu1 %v4364_v49  ;;  %v3801_v49 = vld [vmem:[%s4847_s6 + $0x8] sm:$0xff] }
0x1368   :  { %3557 = vmatprep.subr.mxu1 %v4096_v5 }
0x1369   :  { %3558 = vmatpush3.msra.mxu1 %v4371_v50  ;;  %v3802_v50 = vld [vmem:[%s4847_s6] sm:$0xff] }
0x136a   :  { %3560 = vmatmul.mubr.msk.f32.vlgmr.msra.gmra.mxu1 %vm348_vm2, %v2096_v34  ;;  %3573 = vmatprep.subr.mxu1 %v4096_v5 }
0x136b   :  { %3574 = vmatpush3.msra.mxu1 %v3799_v46  ;;  %3581 = vmatprep.mubr.msk.f32.mxu1 %vm4097_vm1, %v4096_v5 }
0x136c   :  { %3575 = vmatprep.subr.mxu1 %v4096_v5 }
0x136d   :  { %3576 = vmatpush3.msra.mxu1 %v3800_v48 }
0x136e   :  { %3577 = vmatprep.subr.mxu1 %v4096_v5 }
0x136f   :  { %3578 = vmatpush3.msra.mxu1 %v3801_v49 }
0x1370   :  { %3579 = vmatprep.subr.mxu1 %v4096_v5 }
0x1371   :  { %3580 = vmatpush3.msra.mxu1 %v3802_v50 }
0x1372   :  { %3604 = vmatprep.subr.mxu1 %v2717_v30 }
0x1375   :  { %v2091_v35 = vpop.permute.xlu1 %2090 }
0x1376   :  { %2093 = vst.msk [vmem:[#allocation2 + $0x28] sm:$0xff] %vm348_vm2, %v2091_v35  ;;  %3549 = vmatmul.mubr.msk.f32.vlgmr.msra.gmra.mxu0 %vm348_vm2, %v2091_v35 }
0x1377   :  { %3563 = vmatpush3.msra.mxu0 %v3803_v37  ;;  %3570 = vmatprep.mubr.msk.f32.mxu0 %vm4097_vm1, %v4096_v5  ;;  %v4766_v37 = vld [vmem:[#allocation14] ss:$0 sm:$0xff] }
0x1378   :  { %3564 = vmatprep.subr.mxu0 %v4096_v5 }
0x1379   :  { %3565 = vmatpush3.msra.mxu0 %v3804_v38 }
0x137a   :  { %3566 = vmatprep.subr.mxu0 %v4096_v5 }
0x137b   :  { %3567 = vmatpush3.msra.mxu0 %v3805_v40 }
0x137c   :  { %3568 = vmatprep.subr.mxu0 %v4096_v5  ;;  %v4736_v5 = vld [vmem:[%s4849_s8] ss:$0 sm:$0xff]  ;;  %s4100_s8 = smov 96  }
0x137d   :  { %3569 = vmatpush3.msra.mxu0 %v3806_v43 }
0x137e   :  { %3584 = vmatprep.subr.mxu0 %v2569_v17 }
0x1422   :  { %v2165_v44 = vpop.f32.mrf.mxu1 }
0x1423   :  { %v2169_v45 = vadd.f32 %v2165_v44, %v326_v14 }
0x1424   :  { %v3539_v47 = vpop.f32.mrf.mxu1 }
0x1425   :  { %3770 = vtanh.f32 %v2169_v45  ;;  %v3107_v36 = vmul.f32 -1.442695, %v2169_v45 }
0x142a   :  { %v2332_v53 = vpop.f32.mrf.mxu1 }
0x142c   :  { %v3561_v54 = vpop.f32.mrf.mxu1 }
0x1432   :  { %v3771_v55 = vpop.eup %3770 }
0x1433   :  { %2179 = vrot.lane.b32.xlu0 %v3771_v55, %s4098_s23 }
0x1436   :  { %v2262_v56 = vpop.f32.mrf.mxu0 }
0x1437   :  { %v2333_v51 = vadd.f32 %v2332_v53, %v2262_v56 }
0x1438   :  { %v3550_v57 = vpop.f32.mrf.mxu0 }
0x1439   :  { %v2336_v58 = vadd.f32 %v4736_v5, %v2333_v51 }
0x143b   :  { %3772 = vtanh.f32 %v2336_v58  ;;  %v3110_v42 = vmul.f32 -1.442695, %v2336_v58 }
0x143c   :  { %3774 = vpow2.f32 %v3107_v36 }
0x1448   :  { %v3773_v16 = vpop.eup %3772 }
0x1449   :  { %2346 = vrot.lane.b32.xlu1 %v3773_v16, %s4098_s23  ;;  %v3775_v39 = vpop.eup %3774 }
0x144a   :  { %v2173_v41 = vadd.f32 1.0, %v3775_v39 }
0x144c   :  { %3776 = vrcp.f32 %v2173_v41 }
0x144d   :  { %3778 = vpow2.f32 %v3110_v42 }
0x1459   :  { %v3777_v60 = vpop.eup %3776 }
0x145a   :  { %v3779_v63 = vpop.eup %3778  ;;  %v2177_v4 = vmul.f32 %v3777_v60, %v4683_v11  ;;  %v2559_v11 = vld [vmem:[#allocation2 + $0x8] sm:$0xff] }
0x145b   :  { %v2340_v52 = vadd.f32 1.0, %v3779_v63 }
0x145d   :  { %3780 = vrcp.f32 %v2340_v52 }
0x146a   :  { %v3781_v0 = vpop.eup %3780 }
0x146b   :  { %v2344_v12 = vmul.f32 %v3781_v0, %v4688_v29  ;;  %v2563_v29 = vld [vmem:[#allocation2 + $0x28] sm:$0xff] }
0x14a5   :  { %v2180_v61 = vpop.permute.xlu0 %2179 }
0x14a6   :  { %v2182_v62 = vmul.f32 %v3777_v60, %v2180_v61 }
0x14a8   :  { %2184 = vrot.lane.b32.xlu0 %v2182_v62, %s4099_s24 }
0x14bb   :  { %v2347_v1 = vpop.permute.xlu1 %2346 }
0x14bc   :  { %v2349_v2 = vmul.f32 %v3781_v0, %v2347_v1 }
0x14be   :  { %2351 = vrot.lane.b32.xlu1 %v2349_v2, %s4099_s24 }
0x151a   :  { %v2185_v6 = vpop.permute.xlu0 %2184 }
0x151b   :  { %v4743_v7 = vadd.f32 %v2185_v6, %v2177_v4  ;;  %v2865_v6 = vld [vmem:[%s4854_s13 + $0x18] sm:$0xff] }
0x151d   :  { %3782 = vtanh.f32 %v4743_v7 }
0x152a   :  { %v3783_v9 = vpop.eup %3782 }
0x152b   :  { %2190 = vrot.lane.b32.xlu0 %v3783_v9, %s4098_s23  ;;  %v2864_v9 = vld [vmem:[%s4854_s13 + $0x10] sm:$0xff] }
0x1530   :  { %v2352_v15 = vpop.permute.xlu1 %2351 }
0x1531   :  { %v4748_v19 = vadd.f32 %v2352_v15, %v2344_v12  ;;  %v2863_v12 = vld [vmem:[%s4854_s13 + $0x8] sm:$0xff] }
0x1533   :  { %3784 = vtanh.f32 %v4748_v19 }
0x1540   :  { %v3785_v3 = vpop.eup %3784 }
0x1541   :  { %2357 = vrot.lane.b32.xlu1 %v3785_v3, %s4098_s23 }
0x159d   :  { %v2191_v20 = vpop.permute.xlu0 %2190 }
0x159e   :  { %v2193_v21 = vmul.f32 %v3777_v60, %v2191_v20 }
0x15a0   :  { %2439 = vrot.lane.b32.xlu1 %v2193_v21, %s4099_s24 }
0x15b3   :  { %v2358_v22 = vpop.permute.xlu1 %2357 }
0x15b4   :  { %v2360_v23 = vmul.f32 %v3781_v0, %v2358_v22 }
0x15b6   :  { %2362 = vrot.lane.b32.xlu0 %v2360_v23, %s4099_s24 }
0x1612   :  { %v2440_v8 = vpop.permute.xlu1 %2439 }
0x1613   :  { %2544 = vst.msk [vmem:[#allocation21] sm:$0xff] %vm348_vm2, %v2440_v8  ;;  %3582 = vmatmul.mubr.msk.f32.vlgmr.msra.gmra.mxu1 %vm348_vm2, %v2440_v8  ;;  %v3123_v8 = vld [vmem:[#allocation17] ss:$0 sm:$0xff] }
0x1614   :  { %3605 = vmatpush3.msra.mxu1 %v2717_v30 }
0x1615   :  { %3606 = vmatprep.subr.mxu1 %v2716_v32 }
0x1616   :  { %3607 = vmatpush3.msra.mxu1 %v2716_v32 }
0x1617   :  { %3608 = vmatprep.subr.mxu1 %v2715_v31 }
0x1618   :  { %3609 = vmatpush3.msra.mxu1 %v2715_v31 }
0x1619   :  { %3610 = vmatprep.subr.mxu1 %v2714_v33 }
0x161a   :  { %3611 = vmatpush3.msra.mxu1 %v2714_v33 }
0x1628   :  { %v2363_v59 = vpop.permute.xlu0 %2362 }
0x1629   :  { %2365 = vst.msk [vmem:[#allocation2 + $0x30] sm:$0xff] %vm348_vm2, %v2363_v59  ;;  %3571 = vmatmul.mubr.msk.f32.vlgmr.msra.gmra.mxu0 %vm348_vm2, %v2363_v59 }
0x162a   :  { %3585 = vmatpush3.msra.mxu0 %v2569_v17  ;;  %3592 = vmatprep.mubr.msk.f32.mxu0 %vm348_vm2, %v2558_v25 }
0x162b   :  { %3586 = vmatprep.subr.mxu0 %v2568_v24 }
0x162c   :  { %3587 = vmatpush3.msra.mxu0 %v2568_v24 }
0x162d   :  { %3588 = vmatprep.subr.mxu0 %v2567_v10 }
0x162e   :  { %3589 = vmatpush3.msra.mxu0 %v2567_v10 }
0x162f   :  { %3590 = vmatprep.subr.mxu0 %v2566_v26 }
0x1630   :  { %3591 = vmatpush3.msra.mxu0 %v2566_v26  ;;  %v2564_v27 = vld [vmem:[#allocation2 + $0x30] sm:$0xff] }
0x1631   :  { %3593 = vmatmul.mubr.msk.f32.vlgmr.msra.gmra.mxu0 %vm348_vm2, %v2559_v11  ;;  %3624 = vmatprep.subr.mxu0 %v2865_v6 }
0x1632   :  { %3595 = vmatprep.mubr.msk.f32.mxu0 %vm348_vm2, %v2560_v28  ;;  %3625 = vmatpush3.msra.mxu0 %v2865_v6 }
0x1633   :  { %3626 = vmatprep.subr.mxu0 %v2864_v9 }
0x1634   :  { %3627 = vmatpush3.msra.mxu0 %v2864_v9 }
0x1635   :  { %3596 = vmatmul.mubr.msk.f32.gmra.mxu0 %vm348_vm2, %v2561_v13  ;;  %3628 = vmatprep.subr.mxu0 %v2863_v12 }
0x1636   :  { %3598 = vmatprep.mubr.msk.f32.mxu0 %vm348_vm2, %v2562_v18  ;;  %3629 = vmatpush3.msra.mxu0 %v2863_v12 }
0x1639   :  { %3599 = vmatmul.mubr.msk.f32.gmra.mxu0 %vm348_vm2, %v2563_v29 }
0x163a   :  { %3601 = vmatprep.mubr.msk.f32.mxu0 %vm348_vm2, %v2564_v27 }
0x16d3   :  { %v2509_v34 = vpop.f32.mrf.mxu1 }
0x16d5   :  { %v3583_v46 = vpop.f32.mrf.mxu1 }
0x16e9   :  { %v2434_v48 = vpop.f32.mrf.mxu0 }
0x16ea   :  { %v2510_v49 = vadd.f32 %v2509_v34, %v2434_v48 }
0x16eb   :  { %v3572_v50 = vpop.f32.mrf.mxu0 }
0x16ec   :  { %v2513_v35 = vadd.f32 %v4736_v5, %v2510_v49  ;;  %v3132_v50 = vld [vmem:[#allocation18] ss:$0 sm:$0xff] }
0x16ee   :  { %3786 = vtanh.f32 %v2513_v35  ;;  %v3113_v42 = vmul.f32 -1.442695, %v2513_v35 }
0x16f0   :  { %3788 = vpow2.f32 %v3113_v42 }
0x16f1   :  { %v3594_v38 = vpop.f32.mrf.mxu0 }
0x16f2   :  { %v2673_v40 = vadd.f32 %v3594_v38, %v4766_v37 }
0x16f3   :  { %v2667_v43 = vpop.f32.mrf.mxu0 }
0x16f4   :  { %v2668_v14 = vadd.f32 %v4766_v37, %v2667_v43  ;;  %v2707_v47 = vmax.f32 %v2673_v40, 0.0 }
0x16f5   :  { %v3597_v44 = vpop.f32.mrf.mxu0 }
0x16f6   :  { %v2706_v45 = vmax.f32 %v2668_v14, 0.0  ;;  %v2683_v53 = vadd.f32 %v3597_v44, %v4766_v37 }
0x16f7   :  { %v2677_v54 = vpop.f32.mrf.mxu0 }
0x16f8   :  { %v2678_v55 = vadd.f32 %v4766_v37, %v2677_v54  ;;  %3612 = vmatprep.mubr.msk.f32.mxu1 %vm348_vm2, %v2706_v45  ;;  %v2709_v5 = vmax.f32 %v2683_v53, 0.0 }
0x16f9   :  { %v3600_v56 = vpop.f32.mrf.mxu0  ;;  %3613 = vmatmul.mubr.msk.f32.vlgmr.msra.gmra.mxu1 %vm348_vm2, %v2707_v47 }
0x16fa   :  { %v2708_v51 = vmax.f32 %v2678_v55, 0.0  ;;  %v2693_v58 = vadd.f32 %v3600_v56, %v4766_v37 }
0x16fb   :  { %v3787_v57 = vpop.eup %3786  ;;  %v2687_v16 = vpop.f32.mrf.mxu0 }
0x16fc   :  { %v2688_v36 = vadd.f32 %v4766_v37, %v2687_v16  ;;  %3615 = vmatprep.mubr.msk.f32.mxu1 %vm348_vm2, %v2708_v51  ;;  %2523 = vrot.lane.b32.xlu0 %v3787_v57, %s4098_s23  ;;  %v2711_v41 = vmax.f32 %v2693_v58, 0.0 }
0x16fd   :  { %3616 = vmatmul.mubr.msk.f32.gmra.mxu1 %vm348_vm2, %v2709_v5  ;;  %v3789_v60 = vpop.eup %3788 }
0x16fe   :  { %v2710_v39 = vmax.f32 %v2688_v36, 0.0  ;;  %v2517_v61 = vadd.f32 1.0, %v3789_v60 }
0x1700   :  { %3618 = vmatprep.mubr.msk.f32.mxu1 %vm348_vm2, %v2710_v39  ;;  %3790 = vrcp.f32 %v2517_v61 }
0x1701   :  { %3619 = vmatmul.mubr.msk.f32.gmra.mxu1 %vm348_vm2, %v2711_v41 }
0x170d   :  { %v3791_v62 = vpop.eup %3790 }
0x170e   :  { %v2521_v0 = vmul.f32 %v3791_v62, %v4748_v19 }
0x176e   :  { %v2524_v63 = vpop.permute.xlu0 %2523 }
0x176f   :  { %v2526_v52 = vmul.f32 %v3791_v62, %v2524_v63 }
0x1771   :  { %2528 = vrot.lane.b32.xlu1 %v2526_v52, %s4099_s24 }
0x17b9   :  { %v3614_v17 = vpop.f32.mrf.mxu1 }
0x17ba   :  { %v2821_v10 = vadd.f32 %v3614_v17, %v3123_v8 }
0x17bb   :  { %v2815_v20 = vpop.f32.mrf.mxu1 }
0x17bc   :  { %v2816_v59 = vadd.f32 %v3123_v8, %v2815_v20  ;;  %v2855_v18 = vmax.f32 %v2821_v10, 0.0 }
0x17bd   :  { %v3617_v21 = vpop.f32.mrf.mxu1 }
0x17be   :  { %v2854_v26 = vmax.f32 %v2816_v59, 0.0  ;;  %v2831_v29 = vadd.f32 %v3617_v21, %v3123_v8 }
0x17bf   :  { %v2825_v23 = vpop.f32.mrf.mxu1 }
0x17c0   :  { %v2826_v11 = vadd.f32 %v3123_v8, %v2825_v23  ;;  %v2857_v32 = vmax.f32 %v2831_v29, 0.0 }
0x17c1   :  { %v3620_v25 = vpop.f32.mrf.mxu1 }
0x17c2   :  { %v2856_v27 = vmax.f32 %v2826_v11, 0.0  ;;  %v2841_v31 = vadd.f32 %v3620_v25, %v3123_v8 }
0x17c3   :  { %v2835_v13 = vpop.f32.mrf.mxu1 }
0x17c4   :  { %v2836_v30 = vadd.f32 %v3123_v8, %v2835_v13  ;;  %v2859_v34 = vmax.f32 %v2841_v31, 0.0 }
0x17c6   :  { %v2858_v33 = vmax.f32 %v2836_v30, 0.0 }
0x17e3   :  { %v2529_v1 = vpop.permute.xlu1 %2528 }
0x17e4   :  { %v2531_v2 = vadd.f32 %v2529_v1, %v2521_v0 }
0x17e6   :  { %3792 = vtanh.f32 %v2531_v2 }
0x17f3   :  { %v3793_v4 = vpop.eup %3792 }
0x17f4   :  { %2534 = vrot.lane.b32.xlu0 %v3793_v4, %s4098_s23 }
0x17f8   :  { %2546 = vrot.lane.b32.xlu0 %v4743_v7, %s4100_s8  ;;  %v2862_v7 = vld [vmem:[%s4854_s13] sm:$0xff]  ;;  %s4101_s13 = smov [#allocation21]  }
0x17f9   :  { %3630 = vmatprep.subr.mxu0 %v2862_v7 }
0x17fa   :  { %3631 = vmatpush3.msra.mxu0 %v2862_v7 }
0x1866   :  { %v2535_v15 = vpop.permute.xlu0 %2534 }
0x1867   :  { %v2537_v19 = vmul.f32 %v3791_v62, %v2535_v15 }
0x1869   :  { %2539 = vrot.lane.b32.xlu1 %v2537_v19, %s4099_s24  ;;  %s3028_s24 = sshll.u32 %s4101_s13, 4  ;;  %s3029_s24 = int_to_ptr.vmem [resolvable:$true] %s3028_s24 }
0x186a   :  { %v2547_v3 = vpop.permute.xlu0 %2546  ;;  %s4008_s20 = scalar_lea.vmem %s3029_s24, 256  ;;  %p4013_p9 = scmp.lt.s32.totalorder %s3029_s24, %s3029_s24 }
0x186b   :  { %2549 = vst.msk [vmem:[#allocation23] sm:$0xff] %vm348_vm2, %v2547_v3  ;;  %p4009_p8 = scmp.ne.s32.totalorder %s3029_s24, %s4008_s20  ;;  %p4014_p10 = scmp.lt.s32.totalorder %s4008_s20, %s4008_s20 }
0x186d   :  { %2553 = vrot.lane.b32.xlu1 %v2531_v2, %s4100_s8  ;;  %p4015_p11 = por %p4014_p10, %p4013_p9 }
0x186f   :  { %p4016_p12 = pnand %p4015_p11, %p4009_p8 }
0x18db   :  { %v2540_v22 = vpop.permute.xlu1 %2539 }
0x18dc   :  { %2542 = vst.msk [vmem:[#allocation2 + $0x38] sm:$0xff] %vm348_vm2, %v2540_v22  ;;  %2551 = vst.msk [vmem:[#allocation21 + $0x8] sm:$0xff] %vm348_vm2, %v2540_v22 }
0x18df   :  { %v2554_v24 = vpop.permute.xlu1 %2553 }
0x18e0   :  { %2557 = vst.msk [vmem:[#allocation23 + $0x8] sm:$0xff] %vm348_vm2, %v2554_v24 }
0x18e3   :  { %v2565_v28 = vld [vmem:[#allocation2 + $0x38] sm:$0xff] }
0x18e4   :  { %3602 = vmatmul.mubr.msk.f32.gmra.mxu0 %vm348_vm2, %v2565_v28 }
0x18e5   :  { %3632 = vmatprep.mubr.msk.f32.mxu0 %vm348_vm2, %v2854_v26 }
0x18e8   :  { %3633 = vmatmul.mubr.msk.f32.vlgmr.msra.gmra.mxu0 %vm348_vm2, %v2855_v18 }
0x18e9   :  { %3635 = vmatprep.mubr.msk.f32.mxu0 %vm348_vm2, %v2856_v27 }
0x18ec   :  { %3636 = vmatmul.mubr.msk.f32.gmra.mxu0 %vm348_vm2, %v2857_v32 }
0x18ed   :  { %3638 = vmatprep.mubr.msk.f32.mxu0 %vm348_vm2, %v2858_v33 }
0x18f0   :  { %3639 = vmatmul.mubr.msk.f32.gmra.mxu0 %vm348_vm2, %v2859_v34 }
0x19a4   :  { %v3603_v46 = vpop.f32.mrf.mxu0 }
0x19a5   :  { %v2703_v48 = vadd.f32 %v3603_v46, %v4766_v37 }
0x19a6   :  { %v2697_v49 = vpop.f32.mrf.mxu0 }
0x19a7   :  { %v2698_v35 = vadd.f32 %v4766_v37, %v2697_v49  ;;  %v2713_v14 = vmax.f32 %v2703_v48, 0.0 }
0x19a8   :  { %v3634_v38 = vpop.f32.mrf.mxu0 }
0x19a9   :  { %v2712_v40 = vmax.f32 %v2698_v35, 0.0  ;;  %v2969_v43 = vadd.f32 %v3634_v38, %v3132_v50 }
0x19aa   :  { %v2963_v44 = vpop.f32.mrf.mxu0 }
0x19ab   :  { %3004 = vst.msk [vmem:[#allocation20 + $0x8] sm:$0xff] %vm3002_vm3, %v2969_v43  ;;  %v2964_v45 = vadd.f32 %v3132_v50, %v2963_v44  ;;  %3621 = vmatprep.mubr.msk.f32.mxu1 %vm348_vm2, %v2712_v40 }
0x19ac   :  { %3622 = vmatmul.mubr.msk.f32.gmra.mxu1 %vm348_vm2, %v2713_v14  ;;  %v3637_v47 = vpop.f32.mrf.mxu0 }
0x19ad   :  { %3003 = vst.msk [vmem:[#allocation20] sm:$0xff] %vm3002_vm3, %v2964_v45  ;;  %v2979_v53 = vadd.f32 %v3637_v47, %v3132_v50 }
0x19ae   :  { %v2973_v54 = vpop.f32.mrf.mxu0 }
0x19af   :  { %3006 = vst.msk [vmem:[#allocation20 + $0x18] sm:$0xff] %vm3002_vm3, %v2979_v53  ;;  %v2974_v37 = vadd.f32 %v3132_v50, %v2973_v54 }
0x19b0   :  { %v3640_v55 = vpop.f32.mrf.mxu0 }
0x19b1   :  { %3005 = vst.msk [vmem:[#allocation20 + $0x10] sm:$0xff] %vm3002_vm3, %v2974_v37  ;;  %v2989_v56 = vadd.f32 %v3640_v55, %v3132_v50 }
0x19b2   :  { %v2983_v51 = vpop.f32.mrf.mxu0 }
0x19b3   :  { %3008 = vst.msk [vmem:[#allocation20 + $0x28] sm:$0xff] %vm3002_vm3, %v2989_v56  ;;  %v2984_v57 = vadd.f32 %v3132_v50, %v2983_v51 }
0x19b5   :  { %3007 = vst.msk [vmem:[#allocation20 + $0x20] sm:$0xff] %vm3002_vm3, %v2984_v57 }
0x1a6c   :  { %v3623_v5 = vpop.f32.mrf.mxu1 }
0x1a6d   :  { %v2851_v58 = vadd.f32 %v3623_v5, %v3123_v8 }
0x1a6e   :  { %v2845_v16 = vpop.f32.mrf.mxu1 }
0x1a6f   :  { %v2846_v36 = vadd.f32 %v3123_v8, %v2845_v16  ;;  %v2861_v41 = vmax.f32 %v2851_v58, 0.0 }
0x1a71   :  { %v2860_v39 = vmax.f32 %v2846_v36, 0.0 }
0x1a73   :  { %3641 = vmatprep.mubr.msk.f32.mxu0 %vm348_vm2, %v2860_v39 }
0x1a74   :  { %3642 = vmatmul.mubr.msk.f32.gmra.mxu0 %vm348_vm2, %v2861_v41 }
0x1a75   :  { %4019 = shalt.err (!%p4016_p12)
}
0x1a76   :  { %3034 = dma.vmem_to_hbm [thread:$0]  %s3029_s24, 256, %s4857_s16, [#allocation22], %s4086_s29, %s4086_s29, %s4087_s0  }
0x1a77   :  { %s4102_s22 = smov [#allocation23]  }
0x1a78   :  { %s3040_s11 = sshll.u32 %s4102_s22, 4  ;;  %s3041_s11 = int_to_ptr.vmem [resolvable:$true] %s3040_s11 }
0x1a79   :  { %s4028_s4 = scalar_lea.vmem %s3041_s11, 256  ;;  %p4033_p0 = scmp.lt.s32.totalorder %s3041_s11, %s3041_s11 }
0x1a7a   :  { %p4029_p13 = scmp.ne.s32.totalorder %s3041_s11, %s4028_s4  ;;  %p4034_p1 = scmp.lt.s32.totalorder %s4028_s4, %s4028_s4 }
0x1a7c   :  { %p4035_p2 = por %p4034_p1, %p4033_p0 }
0x1a7e   :  { %p4036_p3 = pnand %p4035_p2, %p4029_p13 }
0x1a80   :  { %4039 = shalt.err (!%p4036_p3)
}
0x1a81   :  { %3046 = dma.vmem_to_hbm [thread:$0]  %s3041_s11, 256, %s4858_s17, [#allocation22], %s4086_s29, %s4086_s29, %s4087_s0  }
0x1a82   :  { %s4103_s7 = smov [#allocation20]  }
0x1a83   :  { %s3016_s16 = sshll.u32 %s4103_s7, 4  ;;  %s3017_s16 = int_to_ptr.vmem [resolvable:$true] %s3016_s16 }
0x1a84   :  { %s4048_s28 = scalar_lea.vmem %s3017_s16, 1024  ;;  %p4053_p5 = scmp.lt.s32.totalorder %s3017_s16, %s3017_s16 }
0x1a85   :  { %p4049_p4 = scmp.ne.s32.totalorder %s3017_s16, %s4048_s28  ;;  %p4054_p6 = scmp.lt.s32.totalorder %s4048_s28, %s4048_s28 }
0x1a87   :  { %p4055_p7 = por %p4054_p6, %p4053_p5 }
0x1a89   :  { %p4056_p8 = pnand %p4055_p7, %p4049_p4 }
0x1b34   :  { %v3643_v42 = vpop.f32.mrf.mxu0 }
0x1b35   :  { %v2999_v60 = vadd.f32 %v3643_v42, %v3132_v50 }
0x1b36   :  { %v2993_v61 = vpop.f32.mrf.mxu0 }
0x1b37   :  { %3010 = vst.msk [vmem:[#allocation20 + $0x38] sm:$0xff] %vm3002_vm3, %v2999_v60  ;;  %v2994_v62 = vadd.f32 %v3132_v50, %v2993_v61 }
0x1b39   :  { %3009 = vst.msk [vmem:[#allocation20 + $0x30] sm:$0xff] %vm3002_vm3, %v2994_v62 }
0x1b3a   :  { %4059 = shalt.err (!%p4056_p8)
}
0x1b3b   :  { %3022 = dma.vmem_to_hbm [thread:$0]  %s3017_s16, 1024, %s4856_s15, [#allocation5], %s4086_s29, %s4086_s29, %s4087_s0  }
0x1b3c   :  { %4080 = dma.done.wait [#allocation5], 1024  }
0x1b3d   :  { %4081 = vsyncadd [#allocation5], 4294966272 }
0x1b3e   :  { %4082 = dma.done.wait [#allocation22], 512  }
0x1b3f   :  { %4083 = vsyncadd [#allocation22], 4294966784 }
0x1b40   :  { %3056 = vsyncpa [#allocation4], 1 }
0x1b41   :  { %3057 = vsyncpa [#allocation7], 1 }
0x1b42   :  { %3058 = vsyncpa [#allocation10], 1 }
0x1b43   :  { %3059 = vsyncpa [#allocation13], 1 }
0x1b44   :  { %3060 = vsyncpa [#allocation16], 1 }
0x1b45   :  { %3061 = vsyncpa [#allocation19], 1 }
0x1b46   :  { %3062 = vsyncpa [#allocation5], 1 }
0x1b47   :  { %3063 = vsyncpa [#allocation22], 1 }

</bundles_post_ra>
